<compile_context>
chip_gen: v7x
topology: tpu7x:2x2x1
jax: 0.10.0
libtpu: 0.0.40
codegen_flags: <defaults>
</compile_context>

<pallas_src>
import functools
import math

import jax
import jax.numpy as jnp
from jax.experimental import pallas as pl
from jax.experimental.pallas import tpu as pltpu

# ---------------- tiny BERT-like config ----------------
VOCAB = 100
MAX_POS = 16
TYPE_VOCAB = 2
HIDDEN = 32
NUM_HEADS = 2
HEAD_DIM = HIDDEN // NUM_HEADS
INTERMEDIATE = 64
NUM_LAYERS = 2
NUM_CLASSES = 4
LN_EPS = 1e-12


def _full_spec(shape):
    return pl.BlockSpec(shape, lambda *_: (0,) * len(shape))


def _layernorm(x, g, b):
    mu = jnp.mean(x, axis=-1, keepdims=True)
    var = jnp.mean((x - mu) ** 2, axis=-1, keepdims=True)
    return (x - mu) * jax.lax.rsqrt(var + LN_EPS) * g + b


# ---------------- Pallas kernels ----------------
def _embed_ln_kernel(word_ref, pos_ref, typ_ref, g_ref, b_ref, o_ref):
    # word: (B, S, H); pos: (1, S, H); typ/g/b: (1, 1, H)
    e = word_ref[...] + pos_ref[...] + typ_ref[...]
    o_ref[...] = _layernorm(e, g_ref[...], b_ref[...])


def _layer_kernel(x_ref, bias_ref, wqkv_ref, bqkv_ref, wo_ref, bo_ref,
                  ln1g_ref, ln1b_ref, wi_ref, bi_ref, wf_ref, bf_ref,
                  ln2g_ref, ln2b_ref, o_ref, ctx_ref,
                  *, batch, seq, nheads, hdim):
    """One full transformer encoder layer, everything resident in VMEM."""
    hsz = nheads * hdim
    scale = 1.0 / math.sqrt(hdim)

    x = x_ref[...]                                             # (B*S, H)
    qkv = (jnp.dot(x, wqkv_ref[...], preferred_element_type=jnp.float32)
           + bqkv_ref[...])                                    # (B*S, 3H)

    # Per-(batch, head) attention with fully static slices; results land in a
    # VMEM scratch laid out directly as the merged-head (B*S, H) context.
    for b in range(batch):
        bias_b = bias_ref[b]                                   # (1, S), 0 / -1e9
        r0, r1 = b * seq, (b + 1) * seq
        for h in range(nheads):
            c0, c1 = h * hdim, (h + 1) * hdim
            q = qkv[r0:r1, c0:c1]                              # (S, Dh)
            k = qkv[r0:r1, hsz + c0:hsz + c1]                  # (S, Dh)
            v = qkv[r0:r1, 2 * hsz + c0:2 * hsz + c1]          # (S, Dh)
            s = jnp.dot(q, k.T, preferred_element_type=jnp.float32) * scale
            s = s + bias_b                                     # additive mask
            s = s - jnp.max(s, axis=-1, keepdims=True)
            p = jnp.exp(s)
            p = p / jnp.sum(p, axis=-1, keepdims=True)
            ctx_ref[r0:r1, c0:c1] = jnp.dot(
                p, v, preferred_element_type=jnp.float32)

    ctx = ctx_ref[...]                                         # (B*S, H)
    attn_out = (jnp.dot(ctx, wo_ref[...], preferred_element_type=jnp.float32)
                + bo_ref[...])
    h1 = _layernorm(attn_out + x, ln1g_ref[...], ln1b_ref[...])

    ff = (jnp.dot(h1, wi_ref[...], preferred_element_type=jnp.float32)
          + bi_ref[...])
    # TODO(synk): BERT uses exact erf-GELU; tanh approximation used here.
    ff = jax.nn.gelu(ff, approximate=True)
    ff2 = (jnp.dot(ff, wf_ref[...], preferred_element_type=jnp.float32)
           + bf_ref[...])
    o_ref[...] = _layernorm(ff2 + h1, ln2g_ref[...], ln2b_ref[...])


def _head_loss_kernel(cls_ref, pw_ref, pb_ref, cw_ref, cb_ref, oh_ref,
                      logits_ref, loss_ref):
    pooled = jnp.tanh(jnp.dot(cls_ref[...], pw_ref[...],
                              preferred_element_type=jnp.float32) + pb_ref[...])
    logits = (jnp.dot(pooled, cw_ref[...],
                      preferred_element_type=jnp.float32) + cb_ref[...])
    logits_ref[...] = logits
    m = jnp.max(logits, axis=-1, keepdims=True)
    lse = jnp.log(jnp.sum(jnp.exp(logits - m), axis=-1, keepdims=True)) + m
    nll = -jnp.sum(oh_ref[...] * (logits - lse), axis=-1, keepdims=True)  # (B,1)
    loss_ref[...] = jnp.sum(nll, axis=0, keepdims=True) / nll.shape[0]


def _head_kernel(cls_ref, pw_ref, pb_ref, cw_ref, cb_ref, logits_ref):
    pooled = jnp.tanh(jnp.dot(cls_ref[...], pw_ref[...],
                              preferred_element_type=jnp.float32) + pb_ref[...])
    logits_ref[...] = (jnp.dot(pooled, cw_ref[...],
                               preferred_element_type=jnp.float32) + cb_ref[...])


# ---------------- Pallas wrappers ----------------
def pallas_embed_ln(word, pos, typ, gamma, beta):
    B, S, H = word.shape
    return pl.pallas_call(
        _embed_ln_kernel,
        out_shape=jax.ShapeDtypeStruct((B, S, H), jnp.float32),
        in_specs=[_full_spec((B, S, H)), _full_spec((1, S, H)),
                  _full_spec((1, 1, H)), _full_spec((1, 1, H)),
                  _full_spec((1, 1, H))],
        out_specs=_full_spec((B, S, H)),
    )(word, pos, typ, gamma.reshape(1, 1, H), beta.reshape(1, 1, H))


def pallas_encoder_layer(x, attn_bias, lp):
    BS, H = x.shape
    B = attn_bias.shape[0]
    S = BS // B
    kern = functools.partial(_layer_kernel, batch=B, seq=S,
                             nheads=NUM_HEADS, hdim=HEAD_DIM)
    in_specs = [
        _full_spec((BS, H)),               # x
        _full_spec((B, 1, S)),             # additive attention bias
        _full_spec((H, 3 * H)),            # wqkv
        _full_spec((1, 3 * H)),            # bqkv
        _full_spec((H, H)),                # wo
        _full_spec((1, H)),                # bo
        _full_spec((1, H)),                # ln1 gamma
        _full_spec((1, H)),                # ln1 beta
        _full_spec((H, INTERMEDIATE)),     # wi
        _full_spec((1, INTERMEDIATE)),     # bi
        _full_spec((INTERMEDIATE, H)),     # wf
        _full_spec((1, H)),                # bf
        _full_spec((1, H)),                # ln2 gamma
        _full_spec((1, H)),                # ln2 beta
    ]
    return pl.pallas_call(
        kern,
        out_shape=jax.ShapeDtypeStruct((BS, H), jnp.float32),
        in_specs=in_specs,
        out_specs=_full_spec((BS, H)),
        scratch_shapes=[pltpu.VMEM((BS, H), jnp.float32)],
    )(x, attn_bias,
      lp['wqkv'], lp['bqkv'].reshape(1, 3 * H),
      lp['wo'], lp['bo'].reshape(1, H),
      lp['ln1_g'].reshape(1, H), lp['ln1_b'].reshape(1, H),
      lp['wi'], lp['bi'].reshape(1, INTERMEDIATE),
      lp['wf'], lp['bf'].reshape(1, H),
      lp['ln2_g'].reshape(1, H), lp['ln2_b'].reshape(1, H))


def pallas_head_with_loss(cls, params, onehot):
    B, H = cls.shape
    C = NUM_CLASSES
    logits, loss = pl.pallas_call(
        _head_loss_kernel,
        out_shape=(jax.ShapeDtypeStruct((B, C), jnp.float32),
                   jax.ShapeDtypeStruct((1, 1), jnp.float32)),
        in_specs=[_full_spec((B, H)), _full_spec((H, H)), _full_spec((1, H)),
                  _full_spec((H, C)), _full_spec((1, C)), _full_spec((B, C))],
        out_specs=[_full_spec((B, C)), _full_spec((1, 1))],
    )(cls, params['pool_w'], params['pool_b'].reshape(1, H),
      params['cls_w'], params['cls_b'].reshape(1, C), onehot)
    return logits, loss[0, 0]


def pallas_head(cls, params):
    B, H = cls.shape
    C = NUM_CLASSES
    return pl.pallas_call(
        _head_kernel,
        out_shape=jax.ShapeDtypeStruct((B, C), jnp.float32),
        in_specs=[_full_spec((B, H)), _full_spec((H, H)), _full_spec((1, H)),
                  _full_spec((H, C)), _full_spec((1, C))],
        out_specs=_full_spec((B, C)),
    )(cls, params['pool_w'], params['pool_b'].reshape(1, H),
      params['cls_w'], params['cls_b'].reshape(1, C))


# ---------------- deterministic parameter init ----------------
def init_params(key):
    keys = iter(jax.random.split(key, 64))

    def nrm(shape):
        return 0.02 * jax.random.normal(next(keys), shape, jnp.float32)

    params = {
        'word_emb': nrm((VOCAB, HIDDEN)),
        'pos_emb': nrm((MAX_POS, HIDDEN)),
        'type_emb': nrm((TYPE_VOCAB, HIDDEN)),
        'emb_ln_g': jnp.ones((HIDDEN,), jnp.float32),
        'emb_ln_b': jnp.zeros((HIDDEN,), jnp.float32),
        'pool_w': nrm((HIDDEN, HIDDEN)),
        'pool_b': jnp.zeros((HIDDEN,), jnp.float32),
        'cls_w': nrm((HIDDEN, NUM_CLASSES)),
        'cls_b': jnp.zeros((NUM_CLASSES,), jnp.float32),
        'layers': [],
    }
    for _ in range(NUM_LAYERS):
        params['layers'].append({
            # fused QKV projection: (H, 3H) / (3H,)
            'wqkv': nrm((HIDDEN, 3 * HIDDEN)),
            'bqkv': jnp.zeros((3 * HIDDEN,), jnp.float32),
            'wo': nrm((HIDDEN, HIDDEN)), 'bo': jnp.zeros((HIDDEN,), jnp.float32),
            'ln1_g': jnp.ones((HIDDEN,), jnp.float32),
            'ln1_b': jnp.zeros((HIDDEN,), jnp.float32),
            'wi': nrm((HIDDEN, INTERMEDIATE)),
            'bi': jnp.zeros((INTERMEDIATE,), jnp.float32),
            'wf': nrm((INTERMEDIATE, HIDDEN)),
            'bf': jnp.zeros((HIDDEN,), jnp.float32),
            'ln2_g': jnp.ones((HIDDEN,), jnp.float32),
            'ln2_b': jnp.zeros((HIDDEN,), jnp.float32),
        })
    return params


# ---------------- forward pass (CrossEncoderModel.forward) ----------------
def cross_encoder_forward(params, input_ids, attention_mask, labels=None):
    B, S = input_ids.shape

    # Embedding gather is XLA glue; +pos +type + LayerNorm fused in one kernel.
    word = params['word_emb'][input_ids].astype(jnp.float32)       # (B, S, H)
    pos = params['pos_emb'][:S][None]                              # (1, S, H)
    typ = params['type_emb'][0][None, None]                        # (1, 1, H) type 0
    h = pallas_embed_ln(word, pos, typ,
                        params['emb_ln_g'], params['emb_ln_b'])    # (B, S, H)
    h = h.reshape(B * S, HIDDEN)

    # BERT-style additive attention bias: 0 keep, -1e9 masked. Computed once.
    attn_bias = (attention_mask.astype(jnp.float32).reshape(B, 1, S) - 1.0) * 1e9

    for lp in params['layers']:
        h = pallas_encoder_layer(h, attn_bias, lp)                 # (B*S, H)

    # Pooler on [CLS] + classifier (+ cross-entropy) fused in one kernel.
    cls = h.reshape(B, S, HIDDEN)[:, 0, :]                         # (B, H)
    if labels is not None:
        onehot = jax.nn.one_hot(labels, NUM_CLASSES, dtype=jnp.float32)
        logits, loss = pallas_head_with_loss(cls, params, onehot)
        return {'loss': loss, 'logits': logits}
    logits = pallas_head(cls, params)
    return {'loss': None, 'logits': logits}


if __name__ == "__main__":
    key = jax.random.PRNGKey(0)
    pk, ik, lk = jax.random.split(key, 3)
    params = init_params(pk)

    B, S = 2, 8
    input_ids = jax.random.randint(ik, (B, S), 0, VOCAB, dtype=jnp.int32)
    attention_mask = jnp.array([[1, 1, 1, 1, 1, 1, 1, 1],
                                [1, 1, 1, 1, 1, 1, 0, 0]], dtype=jnp.int32)
    labels = jax.random.randint(lk, (B,), 0, NUM_CLASSES, dtype=jnp.int32)

    fwd = jax.jit(cross_encoder_forward)
    out = fwd(params, input_ids, attention_mask, labels)
    jax.block_until_ready(out['logits'])
    jax.block_until_ready(out['loss'])
    print("KERNEL_OK")
</pallas_src>

<mosaic_0001>
module attributes {stable_mosaic.version = 11 : i64} {
  func.func @_embed_ln_kernel(%arg0: memref<2x8x32xf32, #tpu.memory_space<vmem>>, %arg1: memref<1x8x32xf32, #tpu.memory_space<vmem>>, %arg2: memref<1x1x32xf32, #tpu.memory_space<vmem>>, %arg3: memref<1x1x32xf32, #tpu.memory_space<vmem>>, %arg4: memref<1x1x32xf32, #tpu.memory_space<vmem>>, %arg5: memref<2x8x32xf32, #tpu.memory_space<vmem>>) attributes {dimension_semantics = [], scalar_prefetch = 0 : i64, scratch_operands = 0 : i64, tpu.core_type = #tpu.core_type<tc>} {
    %c0 = arith.constant 0 : index
    %c0_0 = arith.constant 0 : index
    %c0_1 = arith.constant 0 : index
    %0 = vector.load %arg0[%c0, %c0_0, %c0_1] : memref<2x8x32xf32, #tpu.memory_space<vmem>>, vector<2x8x32xf32>
    %c0_2 = arith.constant 0 : index
    %c0_3 = arith.constant 0 : index
    %c0_4 = arith.constant 0 : index
    %1 = vector.load %arg1[%c0_2, %c0_3, %c0_4] : memref<1x8x32xf32, #tpu.memory_space<vmem>>, vector<1x8x32xf32>
    %2 = vector.broadcast %1 : vector<1x8x32xf32> to vector<2x8x32xf32>
    %3 = arith.addf %0, %2 : vector<2x8x32xf32>
    %c0_5 = arith.constant 0 : index
    %c0_6 = arith.constant 0 : index
    %c0_7 = arith.constant 0 : index
    %4 = vector.load %arg2[%c0_5, %c0_6, %c0_7] : memref<1x1x32xf32, #tpu.memory_space<vmem>>, vector<1x1x32xf32>
    %5 = vector.broadcast %4 : vector<1x1x32xf32> to vector<2x8x32xf32>
    %6 = arith.addf %3, %5 : vector<2x8x32xf32>
    %c0_8 = arith.constant 0 : index
    %c0_9 = arith.constant 0 : index
    %c0_10 = arith.constant 0 : index
    %7 = vector.load %arg3[%c0_8, %c0_9, %c0_10] : memref<1x1x32xf32, #tpu.memory_space<vmem>>, vector<1x1x32xf32>
    %c0_11 = arith.constant 0 : index
    %c0_12 = arith.constant 0 : index
    %c0_13 = arith.constant 0 : index
    %8 = vector.load %arg4[%c0_11, %c0_12, %c0_13] : memref<1x1x32xf32, #tpu.memory_space<vmem>>, vector<1x1x32xf32>
    %cst = arith.constant dense<0.000000e+00> : vector<2x8xf32>
    %9 = vector.multi_reduction <add>, %6, %cst [2] : vector<2x8x32xf32> to vector<2x8xf32>
    %10 = vector.shape_cast %9 : vector<2x8xf32> to vector<2x8x1xf32>
    %cst_14 = arith.constant 3.200000e+01 : f32
    %11 = vector.broadcast %cst_14 : f32 to vector<2x8x1xf32>
    %12 = arith.divf %10, %11 : vector<2x8x1xf32>
    %13 = vector.broadcast %12 : vector<2x8x1xf32> to vector<2x8x32xf32>
    %14 = arith.subf %6, %13 : vector<2x8x32xf32>
    %15 = arith.mulf %14, %14 : vector<2x8x32xf32>
    %cst_15 = arith.constant dense<0.000000e+00> : vector<2x8xf32>
    %16 = vector.multi_reduction <add>, %15, %cst_15 [2] : vector<2x8x32xf32> to vector<2x8xf32>
    %17 = vector.shape_cast %16 : vector<2x8xf32> to vector<2x8x1xf32>
    %cst_16 = arith.constant 3.200000e+01 : f32
    %18 = vector.broadcast %cst_16 : f32 to vector<2x8x1xf32>
    %19 = arith.divf %17, %18 : vector<2x8x1xf32>
    %20 = vector.broadcast %12 : vector<2x8x1xf32> to vector<2x8x32xf32>
    %21 = arith.subf %6, %20 : vector<2x8x32xf32>
    %cst_17 = arith.constant 9.99999996E-13 : f32
    %22 = vector.broadcast %cst_17 : f32 to vector<2x8x1xf32>
    %23 = arith.addf %19, %22 : vector<2x8x1xf32>
    %24 = math.rsqrt %23 : vector<2x8x1xf32>
    %25 = vector.broadcast %24 : vector<2x8x1xf32> to vector<2x8x32xf32>
    %26 = arith.mulf %21, %25 : vector<2x8x32xf32>
    %27 = vector.broadcast %7 : vector<1x1x32xf32> to vector<2x8x32xf32>
    %28 = arith.mulf %26, %27 : vector<2x8x32xf32>
    %29 = vector.broadcast %8 : vector<1x1x32xf32> to vector<2x8x32xf32>
    %30 = arith.addf %28, %29 : vector<2x8x32xf32>
    %c0_18 = arith.constant 0 : index
    %c0_19 = arith.constant 0 : index
    %c0_20 = arith.constant 0 : index
    %31 = vector.load %arg5[%c0_18, %c0_19, %c0_20] : memref<2x8x32xf32, #tpu.memory_space<vmem>>, vector<2x8x32xf32>
    tpu.vector_store %arg5[%c0_18, %c0_19, %c0_20], %30 {strides = array<i32>} : memref<2x8x32xf32, #tpu.memory_space<vmem>>, vector<2x8x32xf32>,
    return
  }
}

module attributes {stable_mosaic.version = 11 : i64} {
  func.func @_head_loss_kernel(%arg0: memref<2x32xf32, #tpu.memory_space<vmem>>, %arg1: memref<32x32xf32, #tpu.memory_space<vmem>>, %arg2: memref<1x32xf32, #tpu.memory_space<vmem>>, %arg3: memref<32x4xf32, #tpu.memory_space<vmem>>, %arg4: memref<1x4xf32, #tpu.memory_space<vmem>>, %arg5: memref<2x4xf32, #tpu.memory_space<vmem>>, %arg6: memref<2x4xf32, #tpu.memory_space<vmem>>, %arg7: memref<1x1xf32, #tpu.memory_space<vmem>>) attributes {dimension_semantics = [], scalar_prefetch = 0 : i64, scratch_operands = 0 : i64, tpu.core_type = #tpu.core_type<tc>} {
    %c0 = arith.constant 0 : index
    %c0_0 = arith.constant 0 : index
    %0 = vector.load %arg0[%c0, %c0_0] : memref<2x32xf32, #tpu.memory_space<vmem>>, vector<2x32xf32>
    %c0_1 = arith.constant 0 : index
    %c0_2 = arith.constant 0 : index
    %1 = vector.load %arg1[%c0_1, %c0_2] : memref<32x32xf32, #tpu.memory_space<vmem>>, vector<32x32xf32>
    %cst = arith.constant dense<0.000000e+00> : vector<2x32xf32>
    %2 = tpu.matmul %0, %1, %cst {dimension_numbers = #tpu.dot_dimension_numbers<[1], [0], [0], [1], [0, 0, 1, 1], [], []>} : vector<2x32xf32>, vector<32x32xf32>, vector<2x32xf32> -> vector<2x32xf32>
    %c0_3 = arith.constant 0 : index
    %c0_4 = arith.constant 0 : index
    %3 = vector.load %arg2[%c0_3, %c0_4] : memref<1x32xf32, #tpu.memory_space<vmem>>, vector<1x32xf32>
    %4 = vector.broadcast %3 : vector<1x32xf32> to vector<2x32xf32>
    %5 = arith.addf %2, %4 : vector<2x32xf32>
    %6 = math.tanh %5 : vector<2x32xf32>
    %c0_5 = arith.constant 0 : index
    %c0_6 = arith.constant 0 : index
    %7 = vector.load %arg3[%c0_5, %c0_6] : memref<32x4xf32, #tpu.memory_space<vmem>>, vector<32x4xf32>
    %cst_7 = arith.constant dense<0.000000e+00> : vector<2x4xf32>
    %8 = tpu.matmul %6, %7, %cst_7 {dimension_numbers = #tpu.dot_dimension_numbers<[1], [0], [0], [1], [0, 0, 1, 1], [], []>} : vector<2x32xf32>, vector<32x4xf32>, vector<2x4xf32> -> vector<2x4xf32>
    %c0_8 = arith.constant 0 : index
    %c0_9 = arith.constant 0 : index
    %9 = vector.load %arg4[%c0_8, %c0_9] : memref<1x4xf32, #tpu.memory_space<vmem>>, vector<1x4xf32>
    %10 = vector.broadcast %9 : vector<1x4xf32> to vector<2x4xf32>
    %11 = arith.addf %8, %10 : vector<2x4xf32>
    %c0_10 = arith.constant 0 : index
    %c0_11 = arith.constant 0 : index
    %12 = vector.load %arg6[%c0_10, %c0_11] : memref<2x4xf32, #tpu.memory_space<vmem>>, vector<2x4xf32>
    tpu.vector_store %arg6[%c0_10, %c0_11], %11 {strides = array<i32>} : memref<2x4xf32, #tpu.memory_space<vmem>>, vector<2x4xf32>,
    %cst_12 = arith.constant dense<0xFF800000> : vector<2xf32>
    %13 = vector.multi_reduction <maximumf>, %11, %cst_12 [1] : vector<2x4xf32> to vector<2xf32>
    %14 = vector.shape_cast %13 : vector<2xf32> to vector<2x1xf32>
    %15 = vector.broadcast %14 : vector<2x1xf32> to vector<2x4xf32>
    %16 = arith.subf %11, %15 : vector<2x4xf32>
    %17 = math.exp %16 : vector<2x4xf32>
    %cst_13 = arith.constant dense<0.000000e+00> : vector<2xf32>
    %18 = vector.multi_reduction <add>, %17, %cst_13 [1] : vector<2x4xf32> to vector<2xf32>
    %19 = vector.shape_cast %18 : vector<2xf32> to vector<2x1xf32>
    %20 = math.log %19 : vector<2x1xf32>
    %21 = arith.addf %20, %14 : vector<2x1xf32>
    %c0_14 = arith.constant 0 : index
    %c0_15 = arith.constant 0 : index
    %22 = vector.load %arg5[%c0_14, %c0_15] : memref<2x4xf32, #tpu.memory_space<vmem>>, vector<2x4xf32>
    %23 = vector.broadcast %21 : vector<2x1xf32> to vector<2x4xf32>
    %24 = arith.subf %11, %23 : vector<2x4xf32>
    %25 = arith.mulf %22, %24 : vector<2x4xf32>
    %cst_16 = arith.constant dense<0.000000e+00> : vector<2xf32>
    %26 = vector.multi_reduction <add>, %25, %cst_16 [1] : vector<2x4xf32> to vector<2xf32>
    %27 = vector.shape_cast %26 : vector<2xf32> to vector<2x1xf32>
    %cst_17 = arith.constant 0.000000e+00 : f32
    %28 = vector.broadcast %cst_17 : f32 to vector<2x1xf32>
    %29 = arith.subf %28, %27 : vector<2x1xf32>
    %cst_18 = arith.constant dense<0.000000e+00> : vector<1xf32>
    %30 = vector.multi_reduction <add>, %29, %cst_18 [0] : vector<2x1xf32> to vector<1xf32>
    %31 = vector.shape_cast %30 : vector<1xf32> to vector<1x1xf32>
    %cst_19 = arith.constant 2.000000e+00 : f32
    %32 = vector.broadcast %cst_19 : f32 to vector<1x1xf32>
    %33 = arith.divf %31, %32 : vector<1x1xf32>
    %c0_20 = arith.constant 0 : index
    %c0_21 = arith.constant 0 : index
    %34 = vector.load %arg7[%c0_20, %c0_21] : memref<1x1xf32, #tpu.memory_space<vmem>>, vector<1x1xf32>
    tpu.vector_store %arg7[%c0_20, %c0_21], %33 {strides = array<i32>} : memref<1x1xf32, #tpu.memory_space<vmem>>, vector<1x1xf32>,
    return
  }
}

module attributes {stable_mosaic.version = 11 : i64} {
  func.func @_layer_kernel(%arg0: memref<16x32xf32, #tpu.memory_space<vmem>>, %arg1: memref<2x1x8xf32, #tpu.memory_space<vmem>>, %arg2: memref<32x96xf32, #tpu.memory_space<vmem>>, %arg3: memref<1x96xf32, #tpu.memory_space<vmem>>, %arg4: memref<32x32xf32, #tpu.memory_space<vmem>>, %arg5: memref<1x32xf32, #tpu.memory_space<vmem>>, %arg6: memref<1x32xf32, #tpu.memory_space<vmem>>, %arg7: memref<1x32xf32, #tpu.memory_space<vmem>>, %arg8: memref<32x64xf32, #tpu.memory_space<vmem>>, %arg9: memref<1x64xf32, #tpu.memory_space<vmem>>, %arg10: memref<64x32xf32, #tpu.memory_space<vmem>>, %arg11: memref<1x32xf32, #tpu.memory_space<vmem>>, %arg12: memref<1x32xf32, #tpu.memory_space<vmem>>, %arg13: memref<1x32xf32, #tpu.memory_space<vmem>>, %arg14: memref<16x32xf32, #tpu.memory_space<vmem>>, %arg15: memref<16x32xf32, #tpu.memory_space<vmem>>) attributes {dimension_semantics = [], scalar_prefetch = 0 : i64, scratch_operands = 1 : i64, tpu.core_type = #tpu.core_type<tc>} {
    %c0 = arith.constant 0 : index
    %c0_0 = arith.constant 0 : index
    %0 = vector.load %arg0[%c0, %c0_0] : memref<16x32xf32, #tpu.memory_space<vmem>>, vector<16x32xf32>
    %c0_1 = arith.constant 0 : index
    %c0_2 = arith.constant 0 : index
    %1 = vector.load %arg2[%c0_1, %c0_2] : memref<32x96xf32, #tpu.memory_space<vmem>>, vector<32x96xf32>
    %cst = arith.constant dense<0.000000e+00> : vector<16x96xf32>
    %2 = tpu.matmul %0, %1, %cst {dimension_numbers = #tpu.dot_dimension_numbers<[1], [0], [0], [1], [0, 0, 1, 1], [], []>} : vector<16x32xf32>, vector<32x96xf32>, vector<16x96xf32> -> vector<16x96xf32>
    %c0_3 = arith.constant 0 : index
    %c0_4 = arith.constant 0 : index
    %3 = vector.load %arg3[%c0_3, %c0_4] : memref<1x96xf32, #tpu.memory_space<vmem>>, vector<1x96xf32>
    %4 = vector.broadcast %3 : vector<1x96xf32> to vector<16x96xf32>
    %5 = arith.addf %2, %4 : vector<16x96xf32>
    %c0_5 = arith.constant 0 : index
    %c0_6 = arith.constant 0 : index
    %c0_7 = arith.constant 0 : index
    %6 = vector.load %arg1[%c0_5, %c0_6, %c0_7] : memref<2x1x8xf32, #tpu.memory_space<vmem>>, vector<1x1x8xf32>
    %7 = vector.shape_cast %6 : vector<1x1x8xf32> to vector<1x8xf32>
    %8 = vector.extract_strided_slice %5 {offsets = [0, 0], sizes = [8, 16], strides = [1, 1]} : vector<16x96xf32> to vector<8x16xf32>
    %9 = vector.extract_strided_slice %5 {offsets = [0, 32], sizes = [8, 16], strides = [1, 1]} : vector<16x96xf32> to vector<8x16xf32>
    %10 = vector.extract_strided_slice %5 {offsets = [0, 64], sizes = [8, 16], strides = [1, 1]} : vector<16x96xf32> to vector<8x16xf32>
    %11 = tpu.transpose %9, [1, 0] : vector<8x16xf32> -> vector<16x8xf32>
    %cst_8 = arith.constant dense<0.000000e+00> : vector<8x8xf32>
    %12 = tpu.matmul %8, %11, %cst_8 {dimension_numbers = #tpu.dot_dimension_numbers<[1], [0], [0], [1], [0, 0, 1, 1], [], []>} : vector<8x16xf32>, vector<16x8xf32>, vector<8x8xf32> -> vector<8x8xf32>
    %cst_9 = arith.constant 2.500000e-01 : f32
    %13 = vector.broadcast %cst_9 : f32 to vector<8x8xf32>
    %14 = arith.mulf %12, %13 : vector<8x8xf32>
    %15 = vector.broadcast %7 : vector<1x8xf32> to vector<8x8xf32>
    %16 = arith.addf %14, %15 : vector<8x8xf32>
    %cst_10 = arith.constant dense<0xFF800000> : vector<8xf32>
    %17 = vector.multi_reduction <maximumf>, %16, %cst_10 [1] : vector<8x8xf32> to vector<8xf32>
    %18 = vector.shape_cast %17 : vector<8xf32> to vector<8x1xf32>
    %19 = vector.broadcast %18 : vector<8x1xf32> to vector<8x8xf32>
    %20 = arith.subf %16, %19 : vector<8x8xf32>
    %21 = math.exp %20 : vector<8x8xf32>
    %cst_11 = arith.constant dense<0.000000e+00> : vector<8xf32>
    %22 = vector.multi_reduction <add>, %21, %cst_11 [1] : vector<8x8xf32> to vector<8xf32>
    %23 = vector.shape_cast %22 : vector<8xf32> to vector<8x1xf32>
    %24 = vector.broadcast %23 : vector<8x1xf32> to vector<8x8xf32>
    %25 = arith.divf %21, %24 : vector<8x8xf32>
    %cst_12 = arith.constant dense<0.000000e+00> : vector<8x16xf32>
    %26 = tpu.matmul %25, %10, %cst_12 {dimension_numbers = #tpu.dot_dimension_numbers<[1], [0], [0], [1], [0, 0, 1, 1], [], []>} : vector<8x8xf32>, vector<8x16xf32>, vector<8x16xf32> -> vector<8x16xf32>
    %c0_13 = arith.constant 0 : index
    %c0_14 = arith.constant 0 : index
    %27 = vector.load %arg15[%c0_13, %c0_14] : memref<16x32xf32, #tpu.memory_space<vmem>>, vector<8x16xf32>
    tpu.vector_store %arg15[%c0_13, %c0_14], %26 {strides = array<i32>} : memref<16x32xf32, #tpu.memory_space<vmem>>, vector<8x16xf32>,
    %28 = vector.extract_strided_slice %5 {offsets = [0, 16], sizes = [8, 16], strides = [1, 1]} : vector<16x96xf32> to vector<8x16xf32>
    %29 = vector.extract_strided_slice %5 {offsets = [0, 48], sizes = [8, 16], strides = [1, 1]} : vector<16x96xf32> to vector<8x16xf32>
    %30 = vector.extract_strided_slice %5 {offsets = [0, 80], sizes = [8, 16], strides = [1, 1]} : vector<16x96xf32> to vector<8x16xf32>
    %31 = tpu.transpose %29, [1, 0] : vector<8x16xf32> -> vector<16x8xf32>
    %cst_15 = arith.constant dense<0.000000e+00> : vector<8x8xf32>
    %32 = tpu.matmul %28, %31, %cst_15 {dimension_numbers = #tpu.dot_dimension_numbers<[1], [0], [0], [1], [0, 0, 1, 1], [], []>} : vector<8x16xf32>, vector<16x8xf32>, vector<8x8xf32> -> vector<8x8xf32>
    %cst_16 = arith.constant 2.500000e-01 : f32
    %33 = vector.broadcast %cst_16 : f32 to vector<8x8xf32>
    %34 = arith.mulf %32, %33 : vector<8x8xf32>
    %35 = vector.broadcast %7 : vector<1x8xf32> to vector<8x8xf32>
    %36 = arith.addf %34, %35 : vector<8x8xf32>
    %cst_17 = arith.constant dense<0xFF800000> : vector<8xf32>
    %37 = vector.multi_reduction <maximumf>, %36, %cst_17 [1] : vector<8x8xf32> to vector<8xf32>
    %38 = vector.shape_cast %37 : vector<8xf32> to vector<8x1xf32>
    %39 = vector.broadcast %38 : vector<8x1xf32> to vector<8x8xf32>
    %40 = arith.subf %36, %39 : vector<8x8xf32>
    %41 = math.exp %40 : vector<8x8xf32>
    %cst_18 = arith.constant dense<0.000000e+00> : vector<8xf32>
    %42 = vector.multi_reduction <add>, %41, %cst_18 [1] : vector<8x8xf32> to vector<8xf32>
    %43 = vector.shape_cast %42 : vector<8xf32> to vector<8x1xf32>
    %44 = vector.broadcast %43 : vector<8x1xf32> to vector<8x8xf32>
    %45 = arith.divf %41, %44 : vector<8x8xf32>
    %cst_19 = arith.constant dense<0.000000e+00> : vector<8x16xf32>
    %46 = tpu.matmul %45, %30, %cst_19 {dimension_numbers = #tpu.dot_dimension_numbers<[1], [0], [0], [1], [0, 0, 1, 1], [], []>} : vector<8x8xf32>, vector<8x16xf32>, vector<8x16xf32> -> vector<8x16xf32>
    %c0_20 = arith.constant 0 : index
    %c16 = arith.constant 16 : index
    %47 = vector.load %arg15[%c0_20, %c16] : memref<16x32xf32, #tpu.memory_space<vmem>>, vector<8x16xf32>
    tpu.vector_store %arg15[%c0_20, %c16], %46 {strides = array<i32>} : memref<16x32xf32, #tpu.memory_space<vmem>>, vector<8x16xf32>,
    %c1 = arith.constant 1 : index
    %c0_21 = arith.constant 0 : index
    %c0_22 = arith.constant 0 : index
    %48 = vector.load %arg1[%c1, %c0_21, %c0_22] : memref<2x1x8xf32, #tpu.memory_space<vmem>>, vector<1x1x8xf32>
    %49 = vector.shape_cast %48 : vector<1x1x8xf32> to vector<1x8xf32>
    %50 = vector.extract_strided_slice %5 {offsets = [8, 0], sizes = [8, 16], strides = [1, 1]} : vector<16x96xf32> to vector<8x16xf32>
    %51 = vector.extract_strided_slice %5 {offsets = [8, 32], sizes = [8, 16], strides = [1, 1]} : vector<16x96xf32> to vector<8x16xf32>
    %52 = vector.extract_strided_slice %5 {offsets = [8, 64], sizes = [8, 16], strides = [1, 1]} : vector<16x96xf32> to vector<8x16xf32>
    %53 = tpu.transpose %51, [1, 0] : vector<8x16xf32> -> vector<16x8xf32>
    %cst_23 = arith.constant dense<0.000000e+00> : vector<8x8xf32>
    %54 = tpu.matmul %50, %53, %cst_23 {dimension_numbers = #tpu.dot_dimension_numbers<[1], [0], [0], [1], [0, 0, 1, 1], [], []>} : vector<8x16xf32>, vector<16x8xf32>, vector<8x8xf32> -> vector<8x8xf32>
    %cst_24 = arith.constant 2.500000e-01 : f32
    %55 = vector.broadcast %cst_24 : f32 to vector<8x8xf32>
    %56 = arith.mulf %54, %55 : vector<8x8xf32>
    %57 = vector.broadcast %49 : vector<1x8xf32> to vector<8x8xf32>
    %58 = arith.addf %56, %57 : vector<8x8xf32>
    %cst_25 = arith.constant dense<0xFF800000> : vector<8xf32>
    %59 = vector.multi_reduction <maximumf>, %58, %cst_25 [1] : vector<8x8xf32> to vector<8xf32>
    %60 = vector.shape_cast %59 : vector<8xf32> to vector<8x1xf32>
    %61 = vector.broadcast %60 : vector<8x1xf32> to vector<8x8xf32>
    %62 = arith.subf %58, %61 : vector<8x8xf32>
    %63 = math.exp %62 : vector<8x8xf32>
    %cst_26 = arith.constant dense<0.000000e+00> : vector<8xf32>
    %64 = vector.multi_reduction <add>, %63, %cst_26 [1] : vector<8x8xf32> to vector<8xf32>
    %65 = vector.shape_cast %64 : vector<8xf32> to vector<8x1xf32>
    %66 = vector.broadcast %65 : vector<8x1xf32> to vector<8x8xf32>
    %67 = arith.divf %63, %66 : vector<8x8xf32>
    %cst_27 = arith.constant dense<0.000000e+00> : vector<8x16xf32>
    %68 = tpu.matmul %67, %52, %cst_27 {dimension_numbers = #tpu.dot_dimension_numbers<[1], [0], [0], [1], [0, 0, 1, 1], [], []>} : vector<8x8xf32>, vector<8x16xf32>, vector<8x16xf32> -> vector<8x16xf32>
    %c8 = arith.constant 8 : index
    %c0_28 = arith.constant 0 : index
    %69 = vector.load %arg15[%c8, %c0_28] : memref<16x32xf32, #tpu.memory_space<vmem>>, vector<8x16xf32>
    tpu.vector_store %arg15[%c8, %c0_28], %68 {strides = array<i32>} : memref<16x32xf32, #tpu.memory_space<vmem>>, vector<8x16xf32>,
    %70 = vector.extract_strided_slice %5 {offsets = [8, 16], sizes = [8, 16], strides = [1, 1]} : vector<16x96xf32> to vector<8x16xf32>
    %71 = vector.extract_strided_slice %5 {offsets = [8, 48], sizes = [8, 16], strides = [1, 1]} : vector<16x96xf32> to vector<8x16xf32>
    %72 = vector.extract_strided_slice %5 {offsets = [8, 80], sizes = [8, 16], strides = [1, 1]} : vector<16x96xf32> to vector<8x16xf32>
    %73 = tpu.transpose %71, [1, 0] : vector<8x16xf32> -> vector<16x8xf32>
    %cst_29 = arith.constant dense<0.000000e+00> : vector<8x8xf32>
    %74 = tpu.matmul %70, %73, %cst_29 {dimension_numbers = #tpu.dot_dimension_numbers<[1], [0], [0], [1], [0, 0, 1, 1], [], []>} : vector<8x16xf32>, vector<16x8xf32>, vector<8x8xf32> -> vector<8x8xf32>
    %cst_30 = arith.constant 2.500000e-01 : f32
    %75 = vector.broadcast %cst_30 : f32 to vector<8x8xf32>
    %76 = arith.mulf %74, %75 : vector<8x8xf32>
    %77 = vector.broadcast %49 : vector<1x8xf32> to vector<8x8xf32>
    %78 = arith.addf %76, %77 : vector<8x8xf32>
    %cst_31 = arith.constant dense<0xFF800000> : vector<8xf32>
    %79 = vector.multi_reduction <maximumf>, %78, %cst_31 [1] : vector<8x8xf32> to vector<8xf32>
    %80 = vector.shape_cast %79 : vector<8xf32> to vector<8x1xf32>
    %81 = vector.broadcast %80 : vector<8x1xf32> to vector<8x8xf32>
    %82 = arith.subf %78, %81 : vector<8x8xf32>
    %83 = math.exp %82 : vector<8x8xf32>
    %cst_32 = arith.constant dense<0.000000e+00> : vector<8xf32>
    %84 = vector.multi_reduction <add>, %83, %cst_32 [1] : vector<8x8xf32> to vector<8xf32>
    %85 = vector.shape_cast %84 : vector<8xf32> to vector<8x1xf32>
    %86 = vector.broadcast %85 : vector<8x1xf32> to vector<8x8xf32>
    %87 = arith.divf %83, %86 : vector<8x8xf32>
    %cst_33 = arith.constant dense<0.000000e+00> : vector<8x16xf32>
    %88 = tpu.matmul %87, %72, %cst_33 {dimension_numbers = #tpu.dot_dimension_numbers<[1], [0], [0], [1], [0, 0, 1, 1], [], []>} : vector<8x8xf32>, vector<8x16xf32>, vector<8x16xf32> -> vector<8x16xf32>
    %c8_34 = arith.constant 8 : index
    %c16_35 = arith.constant 16 : index
    %89 = vector.load %arg15[%c8_34, %c16_35] : memref<16x32xf32, #tpu.memory_space<vmem>>, vector<8x16xf32>
    tpu.vector_store %arg15[%c8_34, %c16_35], %88 {strides = array<i32>} : memref<16x32xf32, #tpu.memory_space<vmem>>, vector<8x16xf32>,
    %c0_36 = arith.constant 0 : index
    %c0_37 = arith.constant 0 : index
    %90 = vector.load %arg15[%c0_36, %c0_37] : memref<16x32xf32, #tpu.memory_space<vmem>>, vector<16x32xf32>
    %c0_38 = arith.constant 0 : index
    %c0_39 = arith.constant 0 : index
    %91 = vector.load %arg4[%c0_38, %c0_39] : memref<32x32xf32, #tpu.memory_space<vmem>>, vector<32x32xf32>
    %cst_40 = arith.constant dense<0.000000e+00> : vector<16x32xf32>
    %92 = tpu.matmul %90, %91, %cst_40 {dimension_numbers = #tpu.dot_dimension_numbers<[1], [0], [0], [1], [0, 0, 1, 1], [], []>} : vector<16x32xf32>, vector<32x32xf32>, vector<16x32xf32> -> vector<16x32xf32>
    %c0_41 = arith.constant 0 : index
    %c0_42 = arith.constant 0 : index
    %93 = vector.load %arg5[%c0_41, %c0_42] : memref<1x32xf32, #tpu.memory_space<vmem>>, vector<1x32xf32>
    %94 = vector.broadcast %93 : vector<1x32xf32> to vector<16x32xf32>
    %95 = arith.addf %92, %94 : vector<16x32xf32>
    %96 = arith.addf %95, %0 : vector<16x32xf32>
    %c0_43 = arith.constant 0 : index
    %c0_44 = arith.constant 0 : index
    %97 = vector.load %arg6[%c0_43, %c0_44] : memref<1x32xf32, #tpu.memory_space<vmem>>, vector<1x32xf32>
    %c0_45 = arith.constant 0 : index
    %c0_46 = arith.constant 0 : index
    %98 = vector.load %arg7[%c0_45, %c0_46] : memref<1x32xf32, #tpu.memory_space<vmem>>, vector<1x32xf32>
    %cst_47 = arith.constant dense<0.000000e+00> : vector<16xf32>
    %99 = vector.multi_reduction <add>, %96, %cst_47 [1] : vector<16x32xf32> to vector<16xf32>
    %100 = vector.shape_cast %99 : vector<16xf32> to vector<16x1xf32>
    %cst_48 = arith.constant 3.200000e+01 : f32
    %101 = vector.broadcast %cst_48 : f32 to vector<16x1xf32>
    %102 = arith.divf %100, %101 : vector<16x1xf32>
    %103 = vector.broadcast %102 : vector<16x1xf32> to vector<16x32xf32>
    %104 = arith.subf %96, %103 : vector<16x32xf32>
    %105 = arith.mulf %104, %104 : vector<16x32xf32>
    %cst_49 = arith.constant dense<0.000000e+00> : vector<16xf32>
    %106 = vector.multi_reduction <add>, %105, %cst_49 [1] : vector<16x32xf32> to vector<16xf32>
    %107 = vector.shape_cast %106 : vector<16xf32> to vector<16x1xf32>
    %cst_50 = arith.constant 3.200000e+01 : f32
    %108 = vector.broadcast %cst_50 : f32 to vector<16x1xf32>
    %109 = arith.divf %107, %108 : vector<16x1xf32>
    %110 = vector.broadcast %102 : vector<16x1xf32> to vector<16x32xf32>
    %111 = arith.subf %96, %110 : vector<16x32xf32>
    %cst_51 = arith.constant 9.99999996E-13 : f32
    %112 = vector.broadcast %cst_51 : f32 to vector<16x1xf32>
    %113 = arith.addf %109, %112 : vector<16x1xf32>
    %114 = math.rsqrt %113 : vector<16x1xf32>
    %115 = vector.broadcast %114 : vector<16x1xf32> to vector<16x32xf32>
    %116 = arith.mulf %111, %115 : vector<16x32xf32>
    %117 = vector.broadcast %97 : vector<1x32xf32> to vector<16x32xf32>
    %118 = arith.mulf %116, %117 : vector<16x32xf32>
    %119 = vector.broadcast %98 : vector<1x32xf32> to vector<16x32xf32>
    %120 = arith.addf %118, %119 : vector<16x32xf32>
    %c0_52 = arith.constant 0 : index
    %c0_53 = arith.constant 0 : index
    %121 = vector.load %arg8[%c0_52, %c0_53] : memref<32x64xf32, #tpu.memory_space<vmem>>, vector<32x64xf32>
    %cst_54 = arith.constant dense<0.000000e+00> : vector<16x64xf32>
    %122 = tpu.matmul %120, %121, %cst_54 {dimension_numbers = #tpu.dot_dimension_numbers<[1], [0], [0], [1], [0, 0, 1, 1], [], []>} : vector<16x32xf32>, vector<32x64xf32>, vector<16x64xf32> -> vector<16x64xf32>
    %c0_55 = arith.constant 0 : index
    %c0_56 = arith.constant 0 : index
    %123 = vector.load %arg9[%c0_55, %c0_56] : memref<1x64xf32, #tpu.memory_space<vmem>>, vector<1x64xf32>
    %124 = vector.broadcast %123 : vector<1x64xf32> to vector<16x64xf32>
    %125 = arith.addf %122, %124 : vector<16x64xf32>
    %126 = arith.mulf %125, %125 : vector<16x64xf32>
    %127 = arith.mulf %125, %126 : vector<16x64xf32>
    %cst_57 = arith.constant 4.471500e-02 : f32
    %128 = vector.broadcast %cst_57 : f32 to vector<16x64xf32>
    %129 = arith.mulf %128, %127 : vector<16x64xf32>
    %130 = arith.addf %125, %129 : vector<16x64xf32>
    %cst_58 = arith.constant 0.797884583 : f32
    %131 = vector.broadcast %cst_58 : f32 to vector<16x64xf32>
    %132 = arith.mulf %131, %130 : vector<16x64xf32>
    %133 = math.tanh %132 : vector<16x64xf32>
    %cst_59 = arith.constant 1.000000e+00 : f32
    %134 = vector.broadcast %cst_59 : f32 to vector<16x64xf32>
    %135 = arith.addf %134, %133 : vector<16x64xf32>
    %cst_60 = arith.constant 5.000000e-01 : f32
    %136 = vector.broadcast %cst_60 : f32 to vector<16x64xf32>
    %137 = arith.mulf %136, %135 : vector<16x64xf32>
    %138 = arith.mulf %125, %137 : vector<16x64xf32>
    %c0_61 = arith.constant 0 : index
    %c0_62 = arith.constant 0 : index
    %139 = vector.load %arg10[%c0_61, %c0_62] : memref<64x32xf32, #tpu.memory_space<vmem>>, vector<64x32xf32>
    %cst_63 = arith.constant dense<0.000000e+00> : vector<16x32xf32>
    %140 = tpu.matmul %138, %139, %cst_63 {dimension_numbers = #tpu.dot_dimension_numbers<[1], [0], [0], [1], [0, 0, 1, 1], [], []>} : vector<16x64xf32>, vector<64x32xf32>, vector<16x32xf32> -> vector<16x32xf32>
    %c0_64 = arith.constant 0 : index
    %c0_65 = arith.constant 0 : index
    %141 = vector.load %arg11[%c0_64, %c0_65] : memref<1x32xf32, #tpu.memory_space<vmem>>, vector<1x32xf32>
    %142 = vector.broadcast %141 : vector<1x32xf32> to vector<16x32xf32>
    %143 = arith.addf %140, %142 : vector<16x32xf32>
    %144 = arith.addf %143, %120 : vector<16x32xf32>
    %c0_66 = arith.constant 0 : index
    %c0_67 = arith.constant 0 : index
    %145 = vector.load %arg12[%c0_66, %c0_67] : memref<1x32xf32, #tpu.memory_space<vmem>>, vector<1x32xf32>
    %c0_68 = arith.constant 0 : index
    %c0_69 = arith.constant 0 : index
    %146 = vector.load %arg13[%c0_68, %c0_69] : memref<1x32xf32, #tpu.memory_space<vmem>>, vector<1x32xf32>
    %cst_70 = arith.constant dense<0.000000e+00> : vector<16xf32>
    %147 = vector.multi_reduction <add>, %144, %cst_70 [1] : vector<16x32xf32> to vector<16xf32>
    %148 = vector.shape_cast %147 : vector<16xf32> to vector<16x1xf32>
    %cst_71 = arith.constant 3.200000e+01 : f32
    %149 = vector.broadcast %cst_71 : f32 to vector<16x1xf32>
    %150 = arith.divf %148, %149 : vector<16x1xf32>
    %151 = vector.broadcast %150 : vector<16x1xf32> to vector<16x32xf32>
    %152 = arith.subf %144, %151 : vector<16x32xf32>
    %153 = arith.mulf %152, %152 : vector<16x32xf32>
    %cst_72 = arith.constant dense<0.000000e+00> : vector<16xf32>
    %154 = vector.multi_reduction <add>, %153, %cst_72 [1] : vector<16x32xf32> to vector<16xf32>
    %155 = vector.shape_cast %154 : vector<16xf32> to vector<16x1xf32>
    %cst_73 = arith.constant 3.200000e+01 : f32
    %156 = vector.broadcast %cst_73 : f32 to vector<16x1xf32>
    %157 = arith.divf %155, %156 : vector<16x1xf32>
    %158 = vector.broadcast %150 : vector<16x1xf32> to vector<16x32xf32>
    %159 = arith.subf %144, %158 : vector<16x32xf32>
    %cst_74 = arith.constant 9.99999996E-13 : f32
    %160 = vector.broadcast %cst_74 : f32 to vector<16x1xf32>
    %161 = arith.addf %157, %160 : vector<16x1xf32>
    %162 = math.rsqrt %161 : vector<16x1xf32>
    %163 = vector.broadcast %162 : vector<16x1xf32> to vector<16x32xf32>
    %164 = arith.mulf %159, %163 : vector<16x32xf32>
    %165 = vector.broadcast %145 : vector<1x32xf32> to vector<16x32xf32>
    %166 = arith.mulf %164, %165 : vector<16x32xf32>
    %167 = vector.broadcast %146 : vector<1x32xf32> to vector<16x32xf32>
    %168 = arith.addf %166, %167 : vector<16x32xf32>
    %c0_75 = arith.constant 0 : index
    %c0_76 = arith.constant 0 : index
    %169 = vector.load %arg14[%c0_75, %c0_76] : memref<16x32xf32, #tpu.memory_space<vmem>>, vector<16x32xf32>
    tpu.vector_store %arg14[%c0_75, %c0_76], %168 {strides = array<i32>} : memref<16x32xf32, #tpu.memory_space<vmem>>, vector<16x32xf32>,
    return
  }
}

</mosaic_0001>

<bundles_post_ra>
// kernel: cross_encoder_forward.7
= control target key start
LH: loop header
LB: loop body
LE: loop exit
PB: predicated region body
PF: predicated region fallthrough
CT: control target
= control target key end

     0   :  { %13 = vsyncpa [#allocation3], 0  ;;  %v366_v3 = vmov 0.0|0.0   ;;  %vm367_vm0 = vmmov 0   ;;  %v368_v6 = vmov 0.0   ;;  %s477_s0 = inlined_call_operand.vmem [shape: f32[2,32], index: 0, kind: input, shape index: {}]   ;;  %s478_s1 = inlined_call_operand.vmem [shape: f32[32,32], index: 1, kind: input, shape index: {}]   ;;  %s479_s2 = inlined_call_operand.vmem [shape: f32[1,32], index: 2, kind: input, shape index: {}]   ;;  %s480_s3 = inlined_call_operand.vmem [shape: f32[32,4], index: 3, kind: input, shape index: {}]   ;;  %s481_s4 = inlined_call_operand.vmem [shape: f32[1,4], index: 4, kind: input, shape index: {}]   ;;  %s482_s5 = inlined_call_operand.vmem [shape: f32[2,4], index: 5, kind: input, shape index: {}]   ;;  %s483_s6 = inlined_call_operand.hbm [shape: f32[2,4], index: 6, kind: output, shape index: {0}]   ;;  %s484_s7 = inlined_call_operand.hbm [shape: f32[1,1], index: 7, kind: output, shape index: {1}]  }
   0x1   :  { %v28_v0 = vld [vmem:[%s478_s1] sm:$0xff]  ;;  %v29_v1 = vld [vmem:[%s478_s1 + $0x8] sm:$0xff]  ;;  %v30_v2 = vld [vmem:[%s478_s1 + $0x10] sm:$0xff]  ;;  %295 = vmatprep.subr.bf16.mxu0 %v366_v3  ;;  %281 = vmatprep.mubr.msk.f32.mxu0 %vm367_vm0, %v368_v6 }
   0x2   :  { %v296_v4 = vpack.c.bf16 %v29_v1, %v28_v0  ;;  %v31_v5 = vld [vmem:[%s478_s1 + $0x18] sm:$0xff]  ;;  %301 = vmatprep.subr.bf16.mxu1 %v366_v3  ;;  %292 = vmatprep.mubr.msk.f32.mxu1 %vm367_vm0, %v368_v6 }
   0x3   :  { %14 = vsyncpa [#allocation5], 0  ;;  %v299_v7 = vpack.c.bf16 %v31_v5, %v30_v2  ;;  %v27_v8 = vld [vmem:[%s477_s0] sm:$0x3]  ;;  %vm39_vm1 = vcmask 261120   ;;  %v115_v10 = vld [vmem:[%s480_s3 + $0x8] sm:$0xff] }
   0x4   :  { %297 = vmatpush3.bf16.msra.mxu0 %v296_v4  ;;  %v114_v9 = vld [vmem:[%s480_s3] sm:$0xff]  ;;  %v116_v11 = vld [vmem:[%s480_s3 + $0x10] sm:$0xff]  ;;  %v117_v13 = vld [vmem:[%s480_s3 + $0x18] sm:$0xff]  ;;  %vm198_vm2 = vcmask 25600  }
   0x5   :  { %298 = vmatprep.subr.bf16.mxu0 %v366_v3  ;;  %v302_v12 = vpack.c.bf16 %v115_v10, %v114_v9  ;;  %v305_v14 = vpack.c.bf16 %v117_v13, %v116_v11  ;;  %v259_v15 = vld [vmem:[%s479_s2] ss:$0 sm:$0xff] }
   0x6   :  { %v261_v20 = vld [vmem:[%s481_s4] ss:$0 sm:$0xff]  ;;  %s369_s4 = smov [#allocation2]  }
   0x7   :  { %303 = vmatpush3.bf16.msra.mxu1 %v302_v12  ;;  %v212_v34 = vld [vmem:[%s482_s5] sm:$0x3]  ;;  %s237_s21 = sshll.u32 %s369_s4, 4  ;;  %s238_s21 = int_to_ptr.vmem [resolvable:$true] %s237_s21 }
   0x8   :  { %300 = vmatpush3.bf16.msra.mxu0 %v299_v7  ;;  %304 = vmatprep.subr.bf16.mxu1 %v366_v3  ;;  %s318_s22 = scalar_lea.vmem %s238_s21, 32  ;;  %p323_p1 = scmp.lt.s32.totalorder %s238_s21, %s238_s21 }
   0x9   :  { %p319_p0 = scmp.ne.s32.totalorder %s238_s21, %s318_s22  ;;  %p324_p2 = scmp.lt.s32.totalorder %s318_s22, %s318_s22 }
   0xb   :  { %282 = vmatmul.mubr.msk.f32.vlgmr.msra.gmra.mrb[0].mxu0 %vm39_vm1, %v27_v8  ;;  %306 = vmatpush3.bf16.msra.mxu1 %v305_v14  ;;  %p325_p3 = por %p324_p2, %p323_p1 }
   0xd   :  { %p326_p4 = pnand %p325_p3, %p319_p0 }
  0xde   :  { %v109_v16 = vpop.f32.mrb[0].mxu0 }
  0xdf   :  { %v110_v17 = vadd.f32 %v259_v15, %v109_v16  ;;  %v283_v18 = vpop.f32.mrb[1].mxu0 }
  0xe1   :  { %312 = vtanh.f32 %v110_v17 }
  0xeb   :  { %v313_v19 = vpop.eup %312 }
  0xec   :  { %293 = vmatmul.mubr.msk.f32.vlgmr.msra.gmra.mrb[0].mxu1 %vm39_vm1, %v313_v19 }
 0x1bf   :  { %v194_v21 = vpop.f32.mrb[0].mxu1 }
 0x1c0   :  { %v195_v22 = vadd.f32 %v261_v20, %v194_v21  ;;  %v294_v23 = vpop.f32.mrb[1].mxu1 }
 0x1c2   :  { %v200_v24 = vsel %vm198_vm2, %v195_v22, -inf  ;;  %199 = vst.msk [vmem:[#allocation2] sm:$0x3] %vm198_vm2, %v195_v22 }
 0x1c3   :  { %201 = vmax.xlane.f32.xlu0 %v200_v24 }
 0x250   :  { %v202_v25 = vpop.xlane.xlu0 %201 }
 0x251   :  { %v203_v26 = vsub.f32 %v195_v22, %v202_v25 }
 0x253   :  { %v204_v27 = vmul.f32 1.442695, %v203_v26 }
 0x255   :  { %314 = vpow2.f32 %v204_v27 }
 0x25f   :  { %v315_v28 = vpop.eup %314 }
 0x260   :  { %v206_v29 = vsel %vm198_vm2, %v315_v28, 0.0 }
 0x261   :  { %207 = vadd.xlane.f32.xlu0 %v206_v29 }
 0x2ee   :  { %v208_v30 = vpop.xlane.xlu0 %207 }
 0x2ef   :  { %316 = vlog2.f32 %v208_v30 }
 0x2f9   :  { %v317_v31 = vpop.eup %316 }
 0x2fa   :  { %v210_v32 = vmul.f32 0.6931472, %v317_v31 }
 0x2fc   :  { %v211_v33 = vadd.f32 %v210_v32, %v202_v25 }
 0x2fe   :  { %v213_v35 = vsub.f32 %v195_v22, %v211_v33 }
 0x300   :  { %v214_v36 = vmul.f32 %v213_v35, %v212_v34 }
 0x302   :  { %v215_v37 = vsel %vm198_vm2, %v214_v36, 0.0 }
 0x303   :  { %216 = vadd.xlane.f32.xlu1 %v215_v37 }
 0x304   :  { %329 = shalt.err (!%p326_p4)
}
 0x305   :  { %s330_s25 = scalar_lea.hbm %s483_s6, 32 }
 0x306   :  { %p331_p5 = scmp.ne.s32.totalorder %s483_s6, %s330_s25  ;;  %p334_p6 = scmp.lt.u32.totalorder %s330_s25, %s483_s6 }
 0x308   :  { %p336_p7 = pnand %p334_p6, %p331_p5 }
 0x30a   :  { %339 = shalt.err (!%p336_p7)
}
 0x30b   :  { %240 = dma.vmem_to_hbm [thread:$0]  %s238_s21, 32, %s483_s6, [#allocation3]   ;;  %vm219_vm3 = vcmask 1041408   ;;  %vm229_vm4 = vcmask 0  }
 0x30c   :  { %s370_s8 = smov [#allocation4]  }
 0x30d   :  { %s247_s9 = sshll.u32 %s370_s8, 4  ;;  %s248_s9 = int_to_ptr.vmem [resolvable:$true] %s247_s9 }
 0x30e   :  { %s340_s10 = scalar_lea.vmem %s248_s9, 16  ;;  %s344_s11 = scalar_lea.vmem %s248_s9, 32 }
 0x30f   :  { %p341_p8 = scmp.ne.s32.totalorder %s248_s9, %s340_s10  ;;  %p345_p9 = scmp.lt.s32.totalorder %s248_s9, %s248_s9 }
 0x310   :  { %p346_p10 = scmp.lt.s32.totalorder %s344_s11, %s340_s10 }
 0x312   :  { %p347_p11 = por %p346_p10, %p345_p9 }
 0x314   :  { %p348_p12 = pnand %p347_p11, %p341_p8 }
 0x390   :  { %v217_v38 = vpop.xlane.xlu1 %216 }
 0x391   :  { %v218_v39 = vsub.f32 0.0, %v217_v38 }
 0x393   :  { %v220_v40 = vsel %vm219_vm3, %v218_v39, 0.0 }
 0x394   :  { %v221_v41 = vrot.slane %v220_v40, 4 }
 0x396   :  { %v222_v42 = vadd.f32 %v221_v41, %v220_v40 }
 0x398   :  { %v223_v43 = vrot.slane %v222_v42, 2 }
 0x39a   :  { %v224_v44 = vadd.f32 %v223_v43, %v222_v42 }
 0x39c   :  { %v225_v45 = vrot.slane %v224_v44, 1 }
 0x39e   :  { %v226_v46 = vadd.f32 %v225_v45, %v224_v44 }
 0x3a0   :  { %v228_v47 = vmul.f32 0.5, %v226_v46 }
 0x3a2   :  { %230 = vst.msk [vmem:[#allocation4] sm:$0x1] %vm229_vm4, %v228_v47 }
 0x3a3   :  { %351 = shalt.err (!%p348_p12)
}
 0x3a4   :  { %s352_s1 = scalar_lea.hbm %s484_s7, 16 }
 0x3a5   :  { %p353_p13 = scmp.ne.s32.totalorder %s484_s7, %s352_s1  ;;  %p356_p0 = scmp.lt.u32.totalorder %s352_s1, %s484_s7 }
 0x3a7   :  { %p358_p1 = pnand %p356_p0, %p353_p13 }
 0x3a9   :  { %361 = shalt.err (!%p358_p1)
}
 0x3aa   :  { %250 = dma.vmem_to_hbm [thread:$0]  %s248_s9, 16, %s484_s7, [#allocation5]  }
 0x3ab   :  { %362 = dma.done.wait [#allocation3], 32  }
 0x3ac   :  { %363 = vsyncadd [#allocation3], 4294967264 }
 0x3ad   :  { %364 = dma.done.wait [#allocation5], 16  }
 0x3ae   :  { %365 = vsyncadd [#allocation5], 4294967280 }
 0x3af   :  { %257 = vsyncpa [#allocation3], 1 }
 0x3b0   :  { %258 = vsyncpa [#allocation5], 1 }

// kernel: cross_encoder_forward.4
= control target key start
LH: loop header
LB: loop body
LE: loop exit
PB: predicated region body
PF: predicated region fallthrough
CT: control target
= control target key end

     0   :  { %vm36_vm0 = vcmask 261120   ;;  %s153_s0 = inlined_call_operand.vmem [shape: f32[2,8,32], index: 0, kind: input, shape index: {}]   ;;  %s154_s1 = inlined_call_operand.vmem [shape: f32[1,8,32], index: 1, kind: input, shape index: {}]   ;;  %s155_s2 = inlined_call_operand.vmem [shape: f32[1,1,32], index: 2, kind: input, shape index: {}]   ;;  %s156_s3 = inlined_call_operand.vmem [shape: f32[1,1,32], index: 3, kind: input, shape index: {}]   ;;  %s157_s4 = inlined_call_operand.vmem [shape: f32[1,1,32], index: 4, kind: input, shape index: {}]   ;;  %s158_s5 = inlined_call_operand.vmem [shape: f32[2,8,32], index: 5, kind: output, shape index: {}]  }
   0x1   :  { %v20_v0 = vld [vmem:[%s153_s0] sm:$0xff]  ;;  %v21_v4 = vld [vmem:[%s153_s0 + $0x8] sm:$0xff] }
   0x2   :  { %v22_v1 = vld [vmem:[%s154_s1] sm:$0xff] }
   0x3   :  { %v86_v2 = vld [vmem:[%s155_s2] ss:$0 sm:$0xff]  ;;  %v23_v3 = vadd.f32 %v22_v1, %v20_v0  ;;  %v24_v5 = vadd.f32 %v22_v1, %v21_v4 }
   0x4   :  { %v87_v27 = vld [vmem:[%s156_s3] ss:$0 sm:$0xff] }
   0x5   :  { %v32_v6 = vadd.f32 %v86_v2, %v23_v3  ;;  %v33_v7 = vadd.f32 %v86_v2, %v24_v5  ;;  %v88_v29 = vld [vmem:[%s157_s4] ss:$0 sm:$0xff] }
   0x7   :  { %v37_v8 = vsel %vm36_vm0, %v32_v6, 0.0  ;;  %v40_v9 = vsel %vm36_vm0, %v33_v7, 0.0 }
   0x8   :  { %38 = vadd.xlane.f32.xlu0 %v37_v8 }
   0xc   :  { %41 = vadd.xlane.f32.xlu0 %v40_v9 }
  0x95   :  { %v39_v10 = vpop.xlane.xlu0 %38 }
  0x96   :  { %v44_v11 = vmul.f32 0.03125, %v39_v10 }
  0x98   :  { %v46_v12 = vsub.f32 %v32_v6, %v44_v11 }
  0x99   :  { %v42_v13 = vpop.xlane.xlu0 %41 }
  0x9a   :  { %v45_v14 = vmul.f32 0.03125, %v42_v13  ;;  %v48_v15 = vmul.f32 %v46_v12, %v46_v12 }
  0x9c   :  { %v47_v16 = vsub.f32 %v33_v7, %v45_v14  ;;  %v50_v17 = vsel %vm36_vm0, %v48_v15, 0.0 }
  0x9d   :  { %51 = vadd.xlane.f32.xlu1 %v50_v17 }
  0x9e   :  { %v49_v18 = vmul.f32 %v47_v16, %v47_v16 }
  0xa0   :  { %v53_v19 = vsel %vm36_vm0, %v49_v18, 0.0 }
  0xa1   :  { %54 = vadd.xlane.f32.xlu1 %v53_v19 }
 0x12a   :  { %v52_v20 = vpop.xlane.xlu1 %51 }
 0x12b   :  { %v56_v21 = vmul.f32 0.03125, %v52_v20 }
 0x12d   :  { %v58_v22 = vadd.f32 1e-12, %v56_v21 }
 0x12e   :  { %v55_v23 = vpop.xlane.xlu1 %54 }
 0x12f   :  { %89 = vrsqrt.f32 %v58_v22  ;;  %v57_v24 = vmul.f32 0.03125, %v55_v23 }
 0x131   :  { %v59_v25 = vadd.f32 1e-12, %v57_v24 }
 0x133   :  { %91 = vrsqrt.f32 %v59_v25 }
 0x139   :  { %v90_v26 = vpop.eup %89 }
 0x13a   :  { %v62_v28 = vmul.f32 %v90_v26, %v46_v12 }
 0x13c   :  { %v70_v30 = vmul.f32 %v87_v27, %v62_v28 }
 0x13d   :  { %v92_v31 = vpop.eup %91 }
 0x13e   :  { %v78_v32 = vadd.f32 %v88_v29, %v70_v30  ;;  %v63_v33 = vmul.f32 %v92_v31, %v47_v16 }
 0x140   :  { %80 = vst.msk [vmem:[%s158_s5] sm:$0xff] %vm36_vm0, %v78_v32  ;;  %v71_v34 = vmul.f32 %v87_v27, %v63_v33 }
 0x142   :  { %v79_v35 = vadd.f32 %v88_v29, %v71_v34 }
 0x144   :  { %81 = vst.msk [vmem:[%s158_s5 + $0x8] sm:$0xff] %vm36_vm0, %v79_v35 }

// kernel: cross_encoder_forward.5
= control target key start
LH: loop header
LB: loop body
LE: loop exit
PB: predicated region body
PF: predicated region fallthrough
CT: control target
= control target key end

     0   :  { %vm60_vm0 = vcmask 261120   ;;  %v1481_v8 = vmov 0.0   ;;  %vm1482_vm1 = vmmov 0   ;;  %s1484_s26 = smov 96   ;;  %s1485_s27 = smov 80   ;;  %vm146_vm2 = vcmask 130048   ;;  %s1754_s2 = inlined_call_operand.vmem [shape: f32[32,96], index: 2, kind: input, shape index: {}]   ;;  %s1755_s0 = inlined_call_operand.vmem [shape: f32[16,32], index: 0, kind: input, shape index: {}]   ;;  %s1756_s3 = inlined_call_operand.vmem [shape: f32[1,96], index: 3, kind: input, shape index: {}]   ;;  %s1757_s1 = inlined_call_operand.vmem [shape: f32[2,1,8], index: 1, kind: input, shape index: {}]   ;;  %s1758_s4 = inlined_call_operand.vmem [shape: f32[32,32], index: 4, kind: input, shape index: {}]   ;;  %s1759_s5 = inlined_call_operand.vmem [shape: f32[1,32], index: 5, kind: input, shape index: {}]   ;;  %s1760_s8 = inlined_call_operand.vmem [shape: f32[32,64], index: 8, kind: input, shape index: {}]   ;;  %s1761_s6 = inlined_call_operand.vmem [shape: f32[1,32], index: 6, kind: input, shape index: {}]   ;;  %s1762_s7 = inlined_call_operand.vmem [shape: f32[1,32], index: 7, kind: input, shape index: {}]   ;;  %s1763_s10 = inlined_call_operand.vmem [shape: f32[64,32], index: 10, kind: input, shape index: {}]   ;;  %s1764_s9 = inlined_call_operand.vmem [shape: f32[1,64], index: 9, kind: input, shape index: {}]   ;;  %s1765_s11 = inlined_call_operand.vmem [shape: f32[1,32], index: 11, kind: input, shape index: {}]   ;;  %s1766_s12 = inlined_call_operand.vmem [shape: f32[1,32], index: 12, kind: input, shape index: {}]   ;;  %s1767_s13 = inlined_call_operand.vmem [shape: f32[1,32], index: 13, kind: input, shape index: {}]   ;;  %s1768_s14 = inlined_call_operand.vmem [shape: f32[16,32], index: 14, kind: output, shape index: {}]  }
   0x1   :  { %v49_v0 = vld [vmem:[%s1754_s2] sm:$0xff]  ;;  %v50_v1 = vld [vmem:[%s1754_s2 + $0x8] sm:$0xff]  ;;  %v51_v2 = vld [vmem:[%s1754_s2 + $0x10] sm:$0xff]  ;;  %1334 = vmatprep.subr.mxu0 %v1481_v8  ;;  %1336 = vmatprep.mubr.msk.f32.mxu0 %vm1482_vm1, %v1481_v8  ;;  %vm229_vm3 = vcmask 64512   ;;  %s1486_s15 = smov 64   ;;  %s1488_s24 = smov 16  }
   0x2   :  { %v1405_v3 = vpack.c.bf16 %v50_v1, %v49_v0  ;;  %v52_v4 = vld [vmem:[%s1754_s2 + $0x18] sm:$0xff]  ;;  %v1579_v5 = vld [vmem:[%s1755_s0] sm:$0xff]  ;;  %v1586_v7 = vld [vmem:[%s1755_s0 + $0x8] sm:$0xff]  ;;  %s1483_s0 = smov 112   ;;  %vm489_vm4 = vcmask 261248   ;;  %vm1104_vm5 = vcmask 523264  }
   0x3   :  { %v1409_v6 = vpack.c.bf16 %v52_v4, %v51_v2  ;;  %1321 = vmatprep.mubr.msk.f32.mxu1 %vm60_vm0, %v1579_v5  ;;  %v1238_v9 = vld [vmem:[%s1756_s3] ss:$0 sm:$0xff]  ;;  %v1251_v31 = vld [vmem:[%s1757_s1 + $0x1] ss:$0 sm:$0xff] }
   0x4   :  { %1406 = vmatprep.subr.bf16.mxu1 %v1405_v3  ;;  %v1243_v21 = vld [vmem:[%s1757_s1] ss:$0 sm:$0xff]  ;;  %s1487_s1 = smov 48  }
   0x5   :  { %1408 = vmatpush3.bf16.msra.mxu1 %v1405_v3 }
   0x6   :  { %1410 = vmatprep.subr.bf16.mxu1 %v1409_v6 }
   0x9   :  { %1412 = vmatpush3.bf16.msra.mxu1 %v1409_v6 }
   0xa   :  { %1324 = vmatprep.subr.mxu1 %v1481_v8 }
   0xc   :  { %1322 = vmatmul.mubr.msk.f32.vlgmr.msra.gmra.mrb[0].mxu1 %vm60_vm0, %v1586_v7 }
   0xd   :  { %1326 = vmatprep.mubr.msk.f32.mxu1 %vm1482_vm1, %v1481_v8 }
  0xdf   :  { %v1323_v10 = vpop.f32.mrb[0].mxu1 }
  0xe0   :  { %v133_v11 = vpop.f32.mrb[1].mxu1  ;;  %v1603_v13 = vadd.f32 %v1323_v10, %v1238_v9 }
  0xe1   :  { %v1599_v12 = vadd.f32 %v1238_v9, %v133_v11 }
  0xe3   :  { %318 = vrot.lane.b32.xlu1 %v1599_v12, %s1483_s0  ;;  %144 = vrot.lane.b32.xlu0 %v1599_v12, %s1484_s26 }
  0xe7   :  { %494 = vrot.lane.b32.xlu1 %v1603_v13, %s1484_s26  ;;  %320 = vrot.lane.b32.xlu0 %v1599_v12, %s1485_s27 }
  0xeb   :  { %666 = vrot.lane.b32.xlu1 %v1603_v13, %s1483_s0  ;;  %668 = vrot.lane.b32.xlu0 %v1603_v13, %s1485_s27 }
 0x155   :  { %v145_v14 = vpop.permute.xlu0 %144  ;;  %v319_v15 = vpop.permute.xlu1 %318 }
 0x156   :  { %1325 = vmatpush3.xpose.msk.msra.mxu1 %vm146_vm2, %v145_v14 }
 0x157   :  { %1329 = vmatprep.subr.mxu1 %v1481_v8 }
 0x159   :  { %1327 = vmatmul.mubr.msk.f32.vlgmr.msra.gmra.mrb[2].mxu1 %vm146_vm2, %v1599_v12  ;;  %v321_v16 = vpop.permute.xlu0 %320  ;;  %v495_v17 = vpop.permute.xlu1 %494 }
 0x15a   :  { %1335 = vmatpush3.xpose.msk.msra.mxu0 %vm146_vm2, %v321_v16  ;;  %1331 = vmatprep.mubr.msk.f32.mxu1 %vm1482_vm1, %v1481_v8 }
 0x15b   :  { %1344 = vmatprep.subr.mxu0 %v1481_v8 }
 0x15d   :  { %1337 = vmatmul.mubr.msk.f32.vlgmr.msra.gmra.mrb[0].mxu0 %vm146_vm2, %v319_v15  ;;  %v669_v18 = vpop.permute.xlu0 %668  ;;  %v667_v19 = vpop.permute.xlu1 %666 }
 0x15e   :  { %1345 = vmatpush3.xpose.msk.msra.mxu0 %vm146_vm2, %v495_v17  ;;  %1346 = vmatprep.mubr.msk.f32.mxu0 %vm1482_vm1, %v1481_v8  ;;  %v840_v17 = vld [vmem:[%s1758_s4] sm:$0xff] }
 0x15f   :  { %1354 = vmatprep.subr.mxu0 %v1481_v8 }
 0x161   :  { %1347 = vmatmul.mubr.msk.f32.vlgmr.msra.gmra.mrb[2].mxu0 %vm146_vm2, %v1603_v13 }
 0x162   :  { %1355 = vmatpush3.xpose.msk.msra.mxu0 %vm146_vm2, %v669_v18  ;;  %1356 = vmatprep.mubr.msk.f32.mxu0 %vm1482_vm1, %v1481_v8  ;;  %v841_v18 = vld [vmem:[%s1758_s4 + $0x8] sm:$0xff] }
 0x165   :  { %1357 = vmatmul.mubr.msk.f32.vlgmr.msra.gmra.mrb[4].mxu0 %vm146_vm2, %v667_v19  ;;  %v1413_v19 = vpack.c.bf16 %v841_v18, %v840_v17  ;;  %v1093_v18 = vld [vmem:[%s1763_s10 + $0x20] sm:$0xff] }
 0x167   :  { %1414 = vmatprep.subr.bf16.mxu0 %v1413_v19 }
 0x168   :  { %1416 = vmatpush3.bf16.msra.mxu0 %v1413_v19  ;;  %v1094_v19 = vld [vmem:[%s1763_s10 + $0x28] sm:$0xff] }
 0x22c   :  { %v217_v20 = vpop.f32.mrb[2].mxu1 }
 0x22d   :  { %v221_v22 = vmul.f32 0.25, %v217_v20  ;;  %v1328_v23 = vpop.f32.mrb[3].mxu1 }
 0x22f   :  { %v228_v24 = vadd.f32 %v1243_v21, %v221_v22 }
 0x230   :  { %v392_v25 = vpop.f32.mrb[0].mxu0 }
 0x231   :  { %v396_v26 = vmul.f32 0.25, %v392_v25  ;;  %v1338_v27 = vpop.f32.mrb[1].mxu0  ;;  %v230_v28 = vsel %vm229_vm3, %v228_v24, -inf }
 0x232   :  { %231 = vmax.xlane.f32.xlu0 %v230_v28 }
 0x233   :  { %v397_v29 = vadd.f32 %v1243_v21, %v396_v26  ;;  %v842_v21 = vld [vmem:[%s1758_s4 + $0x10] sm:$0xff] }
 0x234   :  { %v566_v30 = vpop.f32.mrb[2].mxu0 }
 0x235   :  { %v570_v32 = vmul.f32 0.25, %v566_v30  ;;  %v1348_v33 = vpop.f32.mrb[3].mxu0  ;;  %v398_v34 = vsel %vm229_vm3, %v397_v29, -inf }
 0x236   :  { %399 = vmax.xlane.f32.xlu1 %v398_v34  ;;  %v1256_v34 = vld [vmem:[%s1759_s5] ss:$0 sm:$0xff] }
 0x237   :  { %v577_v35 = vadd.f32 %v1251_v31, %v570_v32 }
 0x238   :  { %v740_v36 = vpop.f32.mrb[4].mxu0 }
 0x239   :  { %v744_v37 = vmul.f32 0.25, %v740_v36  ;;  %v1358_v38 = vpop.f32.mrb[5].mxu0  ;;  %v578_v39 = vsel %vm229_vm3, %v577_v35, -inf }
 0x23a   :  { %579 = vmax.xlane.f32.xlu0 %v578_v39 }
 0x23b   :  { %v745_v40 = vadd.f32 %v1251_v31, %v744_v37 }
 0x23d   :  { %v746_v41 = vsel %vm229_vm3, %v745_v40, -inf }
 0x23e   :  { %747 = vmax.xlane.f32.xlu0 %v746_v41 }
 0x247   :  { %241 = vrot.lane.b32.xlu1 %v1599_v12, %s1486_s15 }
 0x2bf   :  { %v232_v42 = vpop.xlane.xlu0 %231 }
 0x2c0   :  { %v233_v43 = vsub.f32 %v228_v24, %v232_v42 }
 0x2c2   :  { %v234_v44 = vmul.f32 1.442695, %v233_v43 }
 0x2c3   :  { %v400_v45 = vpop.xlane.xlu1 %399 }
 0x2c4   :  { %1453 = vpow2.f32 %v234_v44  ;;  %v401_v46 = vsub.f32 %v397_v29, %v400_v45 }
 0x2c6   :  { %v402_v47 = vmul.f32 1.442695, %v401_v46 }
 0x2c7   :  { %v242_v48 = vpop.permute.xlu1 %241  ;;  %v580_v49 = vpop.xlane.xlu0 %579 }
 0x2c8   :  { %1455 = vpow2.f32 %v402_v47  ;;  %v581_v50 = vsub.f32 %v577_v35, %v580_v49  ;;  %1330 = vmatpush3.msra.mxu1 %v242_v48 }
 0x2c9   :  { %1339 = vmatprep.subr.mxu1 %v1481_v8 }
 0x2ca   :  { %v582_v51 = vmul.f32 1.442695, %v581_v50 }
 0x2cb   :  { %v748_v52 = vpop.xlane.xlu0 %747 }
 0x2cc   :  { %1457 = vpow2.f32 %v582_v51  ;;  %v749_v53 = vsub.f32 %v745_v40, %v748_v52  ;;  %v980_v52 = vld [vmem:[%s1760_s8 + $0x8] sm:$0xff] }
 0x2ce   :  { %v1454_v54 = vpop.eup %1453  ;;  %v750_v55 = vmul.f32 1.442695, %v749_v53 }
 0x2cf   :  { %v236_v56 = vsel %vm229_vm3, %v1454_v54, 0.0 }
 0x2d0   :  { %1459 = vpow2.f32 %v750_v55  ;;  %237 = vadd.xlane.f32.xlu1 %v236_v56  ;;  %v982_v55 = vld [vmem:[%s1760_s8 + $0x18] sm:$0xff] }
 0x2d2   :  { %v1456_v57 = vpop.eup %1455 }
 0x2d3   :  { %v404_v58 = vsel %vm229_vm3, %v1456_v57, 0.0 }
 0x2d4   :  { %405 = vadd.xlane.f32.xlu0 %v404_v58 }
 0x2d6   :  { %v1458_v59 = vpop.eup %1457 }
 0x2d7   :  { %v584_v60 = vsel %vm229_vm3, %v1458_v59, 0.0 }
 0x2d8   :  { %585 = vadd.xlane.f32.xlu1 %v584_v60 }
 0x2da   :  { %v1460_v61 = vpop.eup %1459 }
 0x2db   :  { %v752_v62 = vsel %vm229_vm3, %v1460_v61, 0.0 }
 0x2dc   :  { %753 = vadd.xlane.f32.xlu0 %v752_v62 }
 0x2e9   :  { %589 = vrot.lane.b32.xlu1 %v1603_v13, %s1486_s15 }
 0x2ed   :  { %757 = vrot.lane.b32.xlu1 %v1603_v13, %s1487_s1 }
 0x2f2   :  { %409 = vrot.lane.b32.xlu0 %v1599_v12, %s1487_s1 }
 0x35d   :  { %v238_v63 = vpop.xlane.xlu1 %237 }
 0x35e   :  { %1461 = vrcp.f32 %v238_v63 }
 0x361   :  { %v406_v0 = vpop.xlane.xlu0 %405 }
 0x362   :  { %1463 = vrcp.f32 %v406_v0  ;;  %v1259_v0 = vld [vmem:[%s1761_s6] ss:$0 sm:$0xff] }
 0x365   :  { %v586_v1 = vpop.xlane.xlu1 %585 }
 0x366   :  { %1465 = vrcp.f32 %v586_v1 }
 0x368   :  { %v1462_v2 = vpop.eup %1461 }
 0x369   :  { %v240_v3 = vmul.f32 %v1462_v2, %v1454_v54  ;;  %v754_v4 = vpop.xlane.xlu0 %753  ;;  %v590_v10 = vpop.permute.xlu1 %589  ;;  %v981_v54 = vld [vmem:[%s1760_s8 + $0x10] sm:$0xff]  ;;  %v1260_v2 = vld [vmem:[%s1762_s7] ss:$0 sm:$0xff] }
 0x36a   :  { %1467 = vrcp.f32 %v754_v4  ;;  %v1425_v56 = vpack.c.bf16 %v982_v55, %v981_v54 }
 0x36b   :  { %1332 = vmatmul.mubr.msk.f32.vlgmr.msra.gmra.mrb[4].mxu1 %vm229_vm3, %v240_v3 }
 0x36c   :  { %v1464_v6 = vpop.eup %1463  ;;  %1341 = vmatprep.mubr.msk.f32.mxu1 %vm1482_vm1, %v1481_v8 }
 0x36d   :  { %v408_v9 = vmul.f32 %v1464_v6, %v1456_v57  ;;  %v410_v11 = vpop.permute.xlu0 %409  ;;  %v758_v14 = vpop.permute.xlu1 %757 }
 0x36e   :  { %1340 = vmatpush3.msra.mxu1 %v410_v11 }
 0x36f   :  { %1342 = vmatmul.mubr.msk.f32.vlgmr.msra.gmra.mrb[6].mxu1 %vm229_vm3, %v408_v9  ;;  %1349 = vmatprep.subr.mxu1 %v1481_v8 }
 0x370   :  { %v1466_v12 = vpop.eup %1465  ;;  %1350 = vmatpush3.msra.mxu1 %v590_v10  ;;  %1351 = vmatprep.mubr.msk.f32.mxu1 %vm1482_vm1, %v1481_v8 }
 0x371   :  { %v588_v13 = vmul.f32 %v1466_v12, %v1458_v59  ;;  %1359 = vmatprep.subr.mxu1 %v1481_v8  ;;  %v1089_v12 = vld [vmem:[%s1763_s10] sm:$0xff] }
 0x373   :  { %1352 = vmatmul.mubr.msk.f32.vlgmr.msra.gmra.mrb[8].mxu1 %vm229_vm3, %v588_v13  ;;  %v1090_v13 = vld [vmem:[%s1763_s10 + $0x8] sm:$0xff] }
 0x374   :  { %v1468_v15 = vpop.eup %1467  ;;  %1360 = vmatpush3.msra.mxu1 %v758_v14  ;;  %1361 = vmatprep.mubr.msk.f32.mxu1 %vm1482_vm1, %v1481_v8  ;;  %v843_v8 = vld [vmem:[%s1758_s4 + $0x18] sm:$0xff]  ;;  %v1429_v14 = vpack.c.bf16 %v1090_v13, %v1089_v12  ;;  %v1268_v12 = vld [vmem:[%s1767_s13] ss:$0 sm:$0xff] }
 0x375   :  { %v756_v16 = vmul.f32 %v1468_v15, %v1460_v61  ;;  %v1417_v23 = vpack.c.bf16 %v843_v8, %v842_v21  ;;  %v1091_v15 = vld [vmem:[%s1763_s10 + $0x10] sm:$0xff]  ;;  %v1096_v8 = vld [vmem:[%s1763_s10 + $0x38] sm:$0xff] }
 0x376   :  { %v1095_v21 = vld [vmem:[%s1763_s10 + $0x30] sm:$0xff] }
 0x377   :  { %1362 = vmatmul.mubr.msk.f32.vlgmr.msra.gmra.mrb[10].mxu1 %vm229_vm3, %v756_v16  ;;  %1418 = vmatprep.subr.bf16.mxu0 %v1417_v23  ;;  %v1092_v16 = vld [vmem:[%s1763_s10 + $0x18] sm:$0xff] }
 0x378   :  { %1420 = vmatpush3.bf16.msra.mxu0 %v1417_v23  ;;  %v1433_v17 = vpack.c.bf16 %v1092_v16, %v1091_v15  ;;  %v1261_v23 = vld [vmem:[%s1764_s9] ss:$0 sm:$0xff] }
 0x379   :  { %1430 = vmatprep.subr.bf16.mxu0 %v1429_v14 }
 0x43e   :  { %v313_v20 = vpop.f32.mrb[4].mxu1 }
 0x43f   :  { %317 = vst.msk [vmem:[#allocation2] sm:$0xff] %vm146_vm2, %v313_v20  ;;  %v1333_v22 = vpop.f32.mrb[5].mxu1  ;;  %v1437_v20 = vpack.c.bf16 %v1094_v19, %v1093_v18 }
 0x440   :  { %v1441_v22 = vpack.c.bf16 %v1096_v8, %v1095_v21 }
 0x442   :  { %v481_v24 = vpop.f32.mrb[6].mxu1 }
 0x443   :  { %486 = vrot.lane.b32.xlu0 %v481_v24, %s1488_s24  ;;  %v1343_v25 = vpop.f32.mrb[7].mxu1 }
 0x446   :  { %v661_v26 = vpop.f32.mrb[8].mxu1 }
 0x447   :  { %665 = vst.msk [vmem:[#allocation2 + $0x8] sm:$0xff] %vm146_vm2, %v661_v26  ;;  %v1353_v27 = vpop.f32.mrb[9].mxu1 }
 0x44a   :  { %v829_v28 = vpop.f32.mrb[10].mxu1 }
 0x44b   :  { %834 = vrot.lane.b32.xlu1 %v829_v28, %s1488_s24  ;;  %v1363_v29 = vpop.f32.mrb[11].mxu1 }
 0x4b5   :  { %v487_v30 = vpop.permute.xlu0 %486 }
 0x4b6   :  { %490 = vst.msk [vmem:[#allocation2] sm:$0xff] %vm489_vm4, %v487_v30 }
 0x4bd   :  { %v835_v31 = vpop.permute.xlu1 %834  ;;  %v838_v32 = vld [vmem:[#allocation2] sm:$0xff] }
 0x4be   :  { %837 = vst.msk [vmem:[#allocation2 + $0x8] sm:$0xff] %vm489_vm4, %v835_v31  ;;  %1372 = vmatprep.mubr.msk.f32.mxu0 %vm60_vm0, %v838_v32 }
 0x4c5   :  { %v839_v33 = vld [vmem:[#allocation2 + $0x8] sm:$0xff] }
 0x4c6   :  { %1373 = vmatmul.mubr.msk.f32.vlgmr.msra.gmra.mrb[6].mxu0 %vm60_vm0, %v839_v33 }
 0x4c7   :  { %1432 = vmatpush3.bf16.msra.mxu0 %v1429_v14 }
 0x4c8   :  { %1434 = vmatprep.subr.bf16.mxu0 %v1433_v17 }
 0x4cb   :  { %1436 = vmatpush3.bf16.msra.mxu0 %v1433_v17 }
 0x4cc   :  { %1438 = vmatprep.subr.bf16.mxu0 %v1437_v20 }
 0x4cf   :  { %1440 = vmatpush3.bf16.msra.mxu0 %v1437_v20 }
 0x4d0   :  { %1442 = vmatprep.subr.bf16.mxu0 %v1441_v22 }
 0x4d3   :  { %1444 = vmatpush3.bf16.msra.mxu0 %v1441_v22 }
 0x599   :  { %v1374_v35 = vpop.f32.mrb[6].mxu0 }
 0x59a   :  { %v929_v36 = vadd.f32 %v1374_v35, %v1256_v34  ;;  %v923_v37 = vpop.f32.mrb[7].mxu0 }
 0x59b   :  { %v924_v38 = vadd.f32 %v1256_v34, %v923_v37 }
 0x59c   :  { %v933_v39 = vadd.f32 %v929_v36, %v1586_v7 }
 0x59d   :  { %v932_v40 = vadd.f32 %v924_v38, %v1579_v5  ;;  %v979_v5 = vld [vmem:[%s1760_s8] sm:$0xff] }
 0x59e   :  { %v939_v41 = vsel %vm60_vm0, %v933_v39, 0.0  ;;  %v1421_v53 = vpack.c.bf16 %v980_v52, %v979_v5 }
 0x59f   :  { %940 = vadd.xlane.f32.xlu1 %v939_v41  ;;  %v936_v42 = vsel %vm60_vm0, %v932_v40, 0.0 }
 0x5a0   :  { %937 = vadd.xlane.f32.xlu0 %v936_v42  ;;  %1422 = vmatprep.subr.bf16.mxu1 %v1421_v53 }
 0x5a1   :  { %1424 = vmatpush3.bf16.msra.mxu1 %v1421_v53 }
 0x5a2   :  { %1426 = vmatprep.subr.bf16.mxu1 %v1425_v56 }
 0x5a5   :  { %1428 = vmatpush3.bf16.msra.mxu1 %v1425_v56 }
 0x62c   :  { %v941_v43 = vpop.xlane.xlu1 %940 }
 0x62d   :  { %v944_v44 = vmul.f32 0.03125, %v941_v43  ;;  %v938_v45 = vpop.xlane.xlu0 %937 }
 0x62e   :  { %v943_v46 = vmul.f32 0.03125, %v938_v45 }
 0x62f   :  { %v946_v47 = vsub.f32 %v933_v39, %v944_v44 }
 0x630   :  { %v945_v48 = vsub.f32 %v932_v40, %v943_v46  ;;  %v1264_v46 = vld [vmem:[%s1765_s11] ss:$0 sm:$0xff] }
 0x631   :  { %v948_v51 = vmul.f32 %v946_v47, %v946_v47 }
 0x632   :  { %v947_v49 = vmul.f32 %v945_v48, %v945_v48 }
 0x633   :  { %v952_v7 = vsel %vm60_vm0, %v948_v51, 0.0 }
 0x634   :  { %v949_v50 = vsel %vm60_vm0, %v947_v49, 0.0 }
 0x635   :  { %950 = vadd.xlane.f32.xlu0 %v949_v50 }
 0x639   :  { %953 = vadd.xlane.f32.xlu0 %v952_v7 }
 0x6c2   :  { %v951_v57 = vpop.xlane.xlu0 %950 }
 0x6c3   :  { %v955_v58 = vmul.f32 0.03125, %v951_v57 }
 0x6c5   :  { %v957_v59 = vadd.f32 1e-12, %v955_v58 }
 0x6c6   :  { %v954_v60 = vpop.xlane.xlu0 %953 }
 0x6c7   :  { %1469 = vrsqrt.f32 %v957_v59  ;;  %v956_v61 = vmul.f32 0.03125, %v954_v60 }
 0x6c9   :  { %v958_v62 = vadd.f32 1e-12, %v956_v61 }
 0x6cb   :  { %1471 = vrsqrt.f32 %v958_v62 }
 0x6d1   :  { %v1470_v63 = vpop.eup %1469 }
 0x6d2   :  { %v961_v1 = vmul.f32 %v1470_v63, %v945_v48 }
 0x6d4   :  { %v969_v3 = vmul.f32 %v1259_v0, %v961_v1 }
 0x6d5   :  { %v1472_v4 = vpop.eup %1471 }
 0x6d6   :  { %v962_v6 = vmul.f32 %v1472_v4, %v946_v47  ;;  %v977_v9 = vadd.f32 %v1260_v2, %v969_v3 }
 0x6d8   :  { %v970_v10 = vmul.f32 %v1259_v0, %v962_v6  ;;  %1383 = vmatprep.mubr.msk.f32.mxu1 %vm60_vm0, %v977_v9 }
 0x6da   :  { %v978_v11 = vadd.f32 %v1260_v2, %v970_v10 }
 0x6dc   :  { %1384 = vmatmul.mubr.msk.f32.vlgmr.msra.gmra.mrb[12].mxu1 %vm60_vm0, %v978_v11 }
 0x7af   :  { %v1385_v24 = vpop.f32.mrb[12].mxu1 }
 0x7b0   :  { %v1068_v25 = vadd.f32 %v1385_v24, %v1261_v23  ;;  %v1062_v26 = vpop.f32.mrb[13].mxu1 }
 0x7b1   :  { %v1063_v27 = vadd.f32 %v1261_v23, %v1062_v26 }
 0x7b2   :  { %v1072_v28 = vmul.f32 %v1068_v25, %v1068_v25 }
 0x7b3   :  { %v1071_v29 = vmul.f32 %v1063_v27, %v1063_v27 }
 0x7b4   :  { %v1074_v30 = vmul.f32 %v1072_v28, %v1068_v25 }
 0x7b5   :  { %v1073_v31 = vmul.f32 %v1071_v29, %v1063_v27 }
 0x7b6   :  { %v1076_v32 = vmul.f32 0.044715, %v1074_v30 }
 0x7b7   :  { %v1075_v33 = vmul.f32 0.044715, %v1073_v31 }
 0x7b8   :  { %v1078_v34 = vadd.f32 %v1076_v32, %v1068_v25 }
 0x7b9   :  { %v1077_v35 = vadd.f32 %v1075_v33, %v1063_v27 }
 0x7ba   :  { %v1080_v36 = vmul.f32 0.7978846, %v1078_v34 }
 0x7bb   :  { %v1079_v37 = vmul.f32 0.7978846, %v1077_v35 }
 0x7bc   :  { %1473 = vtanh.f32 %v1080_v36 }
 0x7bd   :  { %1475 = vtanh.f32 %v1079_v37 }
 0x7c6   :  { %v1474_v38 = vpop.eup %1473 }
 0x7c7   :  { %v1476_v39 = vpop.eup %1475  ;;  %v1084_v40 = vadd.f32 1.0, %v1474_v38 }
 0x7c8   :  { %v1083_v41 = vadd.f32 1.0, %v1476_v39 }
 0x7c9   :  { %v1086_v42 = vmul.f32 0.5, %v1084_v40 }
 0x7ca   :  { %v1085_v43 = vmul.f32 0.5, %v1083_v41 }
 0x7cb   :  { %v1088_v45 = vmul.f32 %v1086_v42, %v1068_v25 }
 0x7cc   :  { %v1087_v44 = vmul.f32 %v1085_v43, %v1063_v27 }
 0x7ce   :  { %1402 = vmatprep.mubr.msk.f32.mxu0 %vm1104_vm5, %v1087_v44 }
 0x7cf   :  { %1403 = vmatmul.mubr.msk.f32.vlgmr.msra.gmra.mrb[8].mxu0 %vm1104_vm5, %v1088_v45 }
 0x8a2   :  { %v1404_v47 = vpop.f32.mrb[8].mxu0 }
 0x8a3   :  { %v1183_v48 = vadd.f32 %v1404_v47, %v1264_v46  ;;  %v1177_v49 = vpop.f32.mrb[9].mxu0 }
 0x8a4   :  { %v1178_v50 = vadd.f32 %v1264_v46, %v1177_v49 }
 0x8a5   :  { %v1187_v51 = vadd.f32 %v1183_v48, %v978_v11 }
 0x8a6   :  { %v1186_v7 = vadd.f32 %v1178_v50, %v977_v9  ;;  %v1267_v9 = vld [vmem:[%s1766_s12] ss:$0 sm:$0xff] }
 0x8a7   :  { %v1193_v5 = vsel %vm60_vm0, %v1187_v51, 0.0 }
 0x8a8   :  { %1194 = vadd.xlane.f32.xlu0 %v1193_v5  ;;  %v1190_v52 = vsel %vm60_vm0, %v1186_v7, 0.0 }
 0x8a9   :  { %1191 = vadd.xlane.f32.xlu1 %v1190_v52 }
 0x935   :  { %v1195_v53 = vpop.xlane.xlu0 %1194 }
 0x936   :  { %v1197_v54 = vmul.f32 0.03125, %v1195_v53  ;;  %v1192_v55 = vpop.xlane.xlu1 %1191 }
 0x937   :  { %v1196_v56 = vmul.f32 0.03125, %v1192_v55 }
 0x938   :  { %v1199_v57 = vsub.f32 %v1187_v51, %v1197_v54 }
 0x939   :  { %v1198_v58 = vsub.f32 %v1186_v7, %v1196_v56 }
 0x93a   :  { %v1201_v59 = vmul.f32 %v1199_v57, %v1199_v57 }
 0x93b   :  { %v1200_v60 = vmul.f32 %v1198_v58, %v1198_v58 }
 0x93c   :  { %v1205_v61 = vsel %vm60_vm0, %v1201_v59, 0.0 }
 0x93d   :  { %1206 = vadd.xlane.f32.xlu0 %v1205_v61  ;;  %v1202_v62 = vsel %vm60_vm0, %v1200_v60, 0.0 }
 0x93e   :  { %1203 = vadd.xlane.f32.xlu1 %v1202_v62 }
 0x9ca   :  { %v1207_v63 = vpop.xlane.xlu0 %1206 }
 0x9cb   :  { %v1209_v0 = vmul.f32 0.03125, %v1207_v63  ;;  %v1204_v1 = vpop.xlane.xlu1 %1203 }
 0x9cc   :  { %v1208_v2 = vmul.f32 0.03125, %v1204_v1 }
 0x9cd   :  { %v1211_v3 = vadd.f32 1e-12, %v1209_v0 }
 0x9ce   :  { %v1210_v4 = vadd.f32 1e-12, %v1208_v2 }
 0x9cf   :  { %1477 = vrsqrt.f32 %v1211_v3 }
 0x9d0   :  { %1479 = vrsqrt.f32 %v1210_v4 }
 0x9d9   :  { %v1478_v6 = vpop.eup %1477 }
 0x9da   :  { %v1480_v10 = vpop.eup %1479  ;;  %v1215_v11 = vmul.f32 %v1478_v6, %v1199_v57 }
 0x9db   :  { %v1214_v13 = vmul.f32 %v1480_v10, %v1198_v58 }
 0x9dc   :  { %v1223_v14 = vmul.f32 %v1267_v9, %v1215_v11 }
 0x9dd   :  { %v1222_v15 = vmul.f32 %v1267_v9, %v1214_v13 }
 0x9de   :  { %v1231_v16 = vadd.f32 %v1268_v12, %v1223_v14 }
 0x9df   :  { %v1230_v17 = vadd.f32 %v1268_v12, %v1222_v15 }
 0x9e0   :  { %1233 = vst.msk [vmem:[%s1768_s14 + $0x8] sm:$0xff] %vm60_vm0, %v1231_v16 }
 0x9e1   :  { %1232 = vst.msk [vmem:[%s1768_s14] sm:$0xff] %vm60_vm0, %v1230_v17 }

</bundles_post_ra>
